<compile_context>
chip_gen: v7x
topology: tpu7x:2x2x1
jax: 0.10.0
libtpu: 0.0.40
codegen_flags: <defaults>
</compile_context>

<pallas_src>
import functools

import jax
import jax.numpy as jnp
from jax.experimental import pallas as pl
from jax.experimental.pallas import tpu as pltpu

# ----------------------------- small config ---------------------------------
N_EMBD = 32
N_HEAD = 4
HEAD_SIZE = N_EMBD // N_HEAD
N_LAYER = 2
BLOCK_SIZE = 16          # max context (position-embedding table rows)
VOCAB_SIZE = 64
FFN_HIDDEN = 4 * N_EMBD
LN_EPS = 1e-5            # torch nn.LayerNorm default
NEG_INF = -1e30          # large finite negative: identical softmax result,
                         # robust against fully-masked rows.
# TODO(synk): dropout (p=0.2) is omitted — forward is implemented in eval mode.


# ------------------------------- kernel --------------------------------------
def _layernorm(x, gamma, beta):
    mu = jnp.mean(x, axis=-1, keepdims=True)
    var = jnp.mean((x - mu) ** 2, axis=-1, keepdims=True)
    return (x - mu) * jax.lax.rsqrt(var + LN_EPS) * gamma + beta


def fused_forward_kernel(
    idx_ref,                       # (B*T, 1) int32
    tok_ref,                       # (V, C)
    pos_ref,                       # (BLOCK_SIZE, C)
    ln1g_ref, ln1b_ref,            # (L, 1, C)
    wqkv_ref,                      # (L, C, 3C)   fused q/k/v projection
    wproj_ref, bproj_ref,          # (L, C, C), (L, 1, C)
    ln2g_ref, ln2b_ref,            # (L, 1, C)
    w1_ref, b1_ref,                # (L, C, 4C), (L, 1, 4C)
    w2_ref, b2_ref,                # (L, 4C, C), (L, 1, C)
    lnfg_ref, lnfb_ref,            # (1, C)
    wlm_ref, blm_ref,              # (C, V), (1, V)
    o_ref,                         # (B, T, V)
    *, batch, seq_len,
):
    C = N_EMBD
    V = VOCAB_SIZE
    BT = batch * seq_len
    scale = C ** (-0.5)            # reference uses n_embd (x.shape[-1])

    # --- token embedding as a one-hot matmul (no gather, stays on the MXU) ---
    ids = idx_ref[...]                                               # (BT, 1)
    onehot = (ids == jax.lax.broadcasted_iota(jnp.int32, (BT, V), 1)
              ).astype(jnp.float32)                                  # (BT, V)
    x = jnp.dot(onehot, tok_ref[...],
                preferred_element_type=jnp.float32)                  # (BT, C)

    # --- position embedding (first T rows, tiled over batch) ---
    pos = pos_ref[0:seq_len, :]                                      # (T, C)
    x = x + jnp.concatenate([pos] * batch, axis=0)                   # (BT, C)

    # --- causal mask: built once, reused by every layer ---
    row = jax.lax.broadcasted_iota(jnp.int32, (seq_len, seq_len), 0)
    col = jax.lax.broadcasted_iota(jnp.int32, (seq_len, seq_len), 1)
    causal = (row >= col)[None, :, :]                                # (1, T, T)

    for l in range(N_LAYER):                                         # static unroll
        # ---- multi-head causal self-attention on layer_norm1(x) ----
        ln1 = _layernorm(x, ln1g_ref[l], ln1b_ref[l])
        qkv = jnp.dot(ln1, wqkv_ref[l],
                      preferred_element_type=jnp.float32)            # (BT, 3C)
        q = qkv[:, 0:C].reshape(batch, seq_len, C)
        k = qkv[:, C:2 * C].reshape(batch, seq_len, C)
        v = qkv[:, 2 * C:3 * C].reshape(batch, seq_len, C)

        head_outs = []
        for h in range(N_HEAD):                                      # static unroll
            sl = slice(h * HEAD_SIZE, (h + 1) * HEAD_SIZE)
            qh, kh, vh = q[:, :, sl], k[:, :, sl], v[:, :, sl]
            # batched over B; contraction on last dims (no explicit .T)
            wei = jnp.einsum('bqd,bkd->bqk', qh, kh,
                             preferred_element_type=jnp.float32) * scale
            wei = jnp.where(causal, wei, NEG_INF)
            wei = jax.nn.softmax(wei, axis=-1)
            head_outs.append(
                jnp.einsum('bqk,bkd->bqd', wei, vh,
                           preferred_element_type=jnp.float32))
        sa = jnp.concatenate(head_outs, axis=-1).reshape(BT, C)
        sa = jnp.dot(sa, wproj_ref[l],
                     preferred_element_type=jnp.float32) + bproj_ref[l]
        x = x + sa                                                   # residual

        # ---- feed-forward on layer_norm2(x) ----
        ln2 = _layernorm(x, ln2g_ref[l], ln2b_ref[l])
        h1 = jnp.dot(ln2, w1_ref[l],
                     preferred_element_type=jnp.float32) + b1_ref[l]
        h1 = jnp.maximum(h1, 0.0)                                    # ReLU
        ff = jnp.dot(h1, w2_ref[l],
                     preferred_element_type=jnp.float32) + b2_ref[l]
        x = x + ff                                                   # residual

    # ---- final LayerNorm + lm_head ----
    xf = _layernorm(x, lnfg_ref[...], lnfb_ref[...])
    logits = jnp.dot(xf, wlm_ref[...],
                     preferred_element_type=jnp.float32) + blm_ref[...]
    o_ref[...] = logits.reshape(batch, seq_len, V)


# ------------------------------ wrapper ---------------------------------------
def bigram_forward(idx, params):
    """Forward pass of BigramLanguageModel (targets=None -> logits only)."""
    B, T = idx.shape
    idx_flat = idx.reshape(B * T, 1).astype(jnp.int32)

    kernel = functools.partial(fused_forward_kernel, batch=B, seq_len=T)
    args = (
        idx_flat,
        params["tok_emb"], params["pos_emb"],
        params["ln1_g"], params["ln1_b"],
        params["wqkv"],
        params["wproj"], params["bproj"],
        params["ln2_g"], params["ln2_b"],
        params["w1"], params["b1"], params["w2"], params["b2"],
        params["lnf_g"], params["lnf_b"],
        params["w_lm"], params["b_lm"],
    )
    vmem = pl.BlockSpec(memory_space=pltpu.MemorySpace.VMEM)
    return pl.pallas_call(
        kernel,
        out_shape=jax.ShapeDtypeStruct((B, T, VOCAB_SIZE), jnp.float32),
        in_specs=[vmem] * len(args),
        out_specs=vmem,
        # No grid: single invocation, everything resident in VMEM.
        # TODO(synk): when B/T scale up, add a parallel batch grid axis
        # (2 TensorCores on v7x) and bf16 weights/activations.
    )(*args)


# ------------------------------ parameters -----------------------------------
def init_params(key):
    def normal(k, shape, scale=0.02):
        return scale * jax.random.normal(k, shape, dtype=jnp.float32)

    C, Hf, L, V = N_EMBD, FFN_HIDDEN, N_LAYER, VOCAB_SIZE
    k_tok, k_pos, k_qkv, k_proj, k_w1, k_w2, k_lm = jax.random.split(key, 7)
    return {
        "tok_emb": normal(k_tok, (V, C), 1.0),
        "pos_emb": normal(k_pos, (BLOCK_SIZE, C), 1.0),
        # per-layer weights stacked on a leading (N_LAYER, ...) axis
        "ln1_g": jnp.ones((L, 1, C), jnp.float32),
        "ln1_b": jnp.zeros((L, 1, C), jnp.float32),
        "wqkv": normal(k_qkv, (L, C, 3 * C)),
        "wproj": normal(k_proj, (L, C, C)),
        "bproj": jnp.zeros((L, 1, C), jnp.float32),
        "ln2_g": jnp.ones((L, 1, C), jnp.float32),
        "ln2_b": jnp.zeros((L, 1, C), jnp.float32),
        "w1": normal(k_w1, (L, C, Hf)),
        "b1": jnp.zeros((L, 1, Hf), jnp.float32),
        "w2": normal(k_w2, (L, Hf, C)),
        "b2": jnp.zeros((L, 1, C), jnp.float32),
        # final LN + lm_head
        "lnf_g": jnp.ones((1, C), jnp.float32),
        "lnf_b": jnp.zeros((1, C), jnp.float32),
        "w_lm": normal(k_lm, (C, V)),
        "b_lm": jnp.zeros((1, V), jnp.float32),
    }


# --------------------------------- main --------------------------------------
if __name__ == "__main__":
    key = jax.random.PRNGKey(0)
    pkey, dkey = jax.random.split(key)
    params = init_params(pkey)

    B, T = 2, 8
    idx = jax.random.randint(dkey, (B, T), 0, VOCAB_SIZE, dtype=jnp.int32)

    logits = jax.jit(bigram_forward)(idx, params)
    logits = jax.block_until_ready(logits)

    assert logits.shape == (B, T, VOCAB_SIZE), logits.shape
    assert bool(jnp.all(jnp.isfinite(logits))), "non-finite logits"
    print("KERNEL_OK")
</pallas_src>

<mosaic_0001>
module attributes {stable_mosaic.version = 11 : i64} {
  func.func @fused_forward_kernel(%arg0: memref<16x1xi32, #tpu.memory_space<vmem>>, %arg1: memref<64x32xf32, #tpu.memory_space<vmem>>, %arg2: memref<16x32xf32, #tpu.memory_space<vmem>>, %arg3: memref<2x1x32xf32, #tpu.memory_space<vmem>>, %arg4: memref<2x1x32xf32, #tpu.memory_space<vmem>>, %arg5: memref<2x32x96xf32, #tpu.memory_space<vmem>>, %arg6: memref<2x32x32xf32, #tpu.memory_space<vmem>>, %arg7: memref<2x1x32xf32, #tpu.memory_space<vmem>>, %arg8: memref<2x1x32xf32, #tpu.memory_space<vmem>>, %arg9: memref<2x1x32xf32, #tpu.memory_space<vmem>>, %arg10: memref<2x32x128xf32, #tpu.memory_space<vmem>>, %arg11: memref<2x1x128xf32, #tpu.memory_space<vmem>>, %arg12: memref<2x128x32xf32, #tpu.memory_space<vmem>>, %arg13: memref<2x1x32xf32, #tpu.memory_space<vmem>>, %arg14: memref<1x32xf32, #tpu.memory_space<vmem>>, %arg15: memref<1x32xf32, #tpu.memory_space<vmem>>, %arg16: memref<32x64xf32, #tpu.memory_space<vmem>>, %arg17: memref<1x64xf32, #tpu.memory_space<vmem>>, %arg18: memref<2x8x64xf32, #tpu.memory_space<vmem>>) attributes {dimension_semantics = [], scalar_prefetch = 0 : i64, scratch_operands = 0 : i64, tpu.core_type = #tpu.core_type<tc>} {
    %c0 = arith.constant 0 : index
    %c0_0 = arith.constant 0 : index
    %0 = vector.load %arg0[%c0, %c0_0] : memref<16x1xi32, #tpu.memory_space<vmem>>, vector<16x1xi32>
    %1 = tpu.iota {dimensions = array<i32: 1>} : vector<16x64xi32>
    %2 = vector.broadcast %0 : vector<16x1xi32> to vector<16x64xi32>
    %3 = arith.cmpi eq, %2, %1 : vector<16x64xi32>
    %4 = arith.extui %3 : vector<16x64xi1> to vector<16x64xi32>
    %5 = arith.sitofp %4 : vector<16x64xi32> to vector<16x64xf32>
    %c0_1 = arith.constant 0 : index
    %c0_2 = arith.constant 0 : index
    %6 = vector.load %arg1[%c0_1, %c0_2] : memref<64x32xf32, #tpu.memory_space<vmem>>, vector<64x32xf32>
    %cst = arith.constant dense<0.000000e+00> : vector<16x32xf32>
    %7 = tpu.matmul %5, %6, %cst {dimension_numbers = #tpu.dot_dimension_numbers<[1], [0], [0], [1], [0, 0, 1, 1], [], []>} : vector<16x64xf32>, vector<64x32xf32>, vector<16x32xf32> -> vector<16x32xf32>
    %c0_3 = arith.constant 0 : index
    %c0_4 = arith.constant 0 : index
    %8 = vector.load %arg2[%c0_3, %c0_4] : memref<16x32xf32, #tpu.memory_space<vmem>>, vector<8x32xf32>
    %9 = tpu.concatenate %8, %8 in 0 : vector<8x32xf32>, vector<8x32xf32> -> vector<16x32xf32>
    %10 = arith.addf %7, %9 : vector<16x32xf32>
    %11 = tpu.iota {dimensions = array<i32: 0>} : vector<8x8xi32>
    %12 = tpu.iota {dimensions = array<i32: 1>} : vector<8x8xi32>
    %13 = arith.cmpi sge, %11, %12 : vector<8x8xi32>
    %14 = vector.shape_cast %13 : vector<8x8xi1> to vector<1x8x8xi1>
    %c0_5 = arith.constant 0 : index
    %c0_6 = arith.constant 0 : index
    %c0_7 = arith.constant 0 : index
    %15 = vector.load %arg3[%c0_5, %c0_6, %c0_7] : memref<2x1x32xf32, #tpu.memory_space<vmem>>, vector<1x1x32xf32>
    %16 = vector.shape_cast %15 : vector<1x1x32xf32> to vector<1x32xf32>
    %c0_8 = arith.constant 0 : index
    %c0_9 = arith.constant 0 : index
    %c0_10 = arith.constant 0 : index
    %17 = vector.load %arg4[%c0_8, %c0_9, %c0_10] : memref<2x1x32xf32, #tpu.memory_space<vmem>>, vector<1x1x32xf32>
    %18 = vector.shape_cast %17 : vector<1x1x32xf32> to vector<1x32xf32>
    %cst_11 = arith.constant dense<0.000000e+00> : vector<16xf32>
    %19 = vector.multi_reduction <add>, %10, %cst_11 [1] : vector<16x32xf32> to vector<16xf32>
    %20 = vector.shape_cast %19 : vector<16xf32> to vector<16x1xf32>
    %cst_12 = arith.constant 3.200000e+01 : f32
    %21 = vector.broadcast %cst_12 : f32 to vector<16x1xf32>
    %22 = arith.divf %20, %21 : vector<16x1xf32>
    %23 = vector.broadcast %22 : vector<16x1xf32> to vector<16x32xf32>
    %24 = arith.subf %10, %23 : vector<16x32xf32>
    %25 = arith.mulf %24, %24 : vector<16x32xf32>
    %cst_13 = arith.constant dense<0.000000e+00> : vector<16xf32>
    %26 = vector.multi_reduction <add>, %25, %cst_13 [1] : vector<16x32xf32> to vector<16xf32>
    %27 = vector.shape_cast %26 : vector<16xf32> to vector<16x1xf32>
    %cst_14 = arith.constant 3.200000e+01 : f32
    %28 = vector.broadcast %cst_14 : f32 to vector<16x1xf32>
    %29 = arith.divf %27, %28 : vector<16x1xf32>
    %30 = vector.broadcast %22 : vector<16x1xf32> to vector<16x32xf32>
    %31 = arith.subf %10, %30 : vector<16x32xf32>
    %cst_15 = arith.constant 9.99999974E-6 : f32
    %32 = vector.broadcast %cst_15 : f32 to vector<16x1xf32>
    %33 = arith.addf %29, %32 : vector<16x1xf32>
    %34 = math.rsqrt %33 : vector<16x1xf32>
    %35 = vector.broadcast %34 : vector<16x1xf32> to vector<16x32xf32>
    %36 = arith.mulf %31, %35 : vector<16x32xf32>
    %37 = vector.broadcast %16 : vector<1x32xf32> to vector<16x32xf32>
    %38 = arith.mulf %36, %37 : vector<16x32xf32>
    %39 = vector.broadcast %18 : vector<1x32xf32> to vector<16x32xf32>
    %40 = arith.addf %38, %39 : vector<16x32xf32>
    %c0_16 = arith.constant 0 : index
    %c0_17 = arith.constant 0 : index
    %c0_18 = arith.constant 0 : index
    %41 = vector.load %arg5[%c0_16, %c0_17, %c0_18] : memref<2x32x96xf32, #tpu.memory_space<vmem>>, vector<1x32x96xf32>
    %42 = vector.shape_cast %41 : vector<1x32x96xf32> to vector<32x96xf32>
    %cst_19 = arith.constant dense<0.000000e+00> : vector<16x96xf32>
    %43 = tpu.matmul %40, %42, %cst_19 {dimension_numbers = #tpu.dot_dimension_numbers<[1], [0], [0], [1], [0, 0, 1, 1], [], []>} : vector<16x32xf32>, vector<32x96xf32>, vector<16x96xf32> -> vector<16x96xf32>
    %44 = vector.extract_strided_slice %43 {offsets = [0, 0], sizes = [16, 32], strides = [1, 1]} : vector<16x96xf32> to vector<16x32xf32>
    %45 = vector.shape_cast %44 : vector<16x32xf32> to vector<2x8x32xf32>
    %46 = vector.extract_strided_slice %43 {offsets = [0, 32], sizes = [16, 32], strides = [1, 1]} : vector<16x96xf32> to vector<16x32xf32>
    %47 = vector.shape_cast %46 : vector<16x32xf32> to vector<2x8x32xf32>
    %48 = vector.extract_strided_slice %43 {offsets = [0, 64], sizes = [16, 32], strides = [1, 1]} : vector<16x96xf32> to vector<16x32xf32>
    %49 = vector.shape_cast %48 : vector<16x32xf32> to vector<2x8x32xf32>
    %50 = vector.extract_strided_slice %45 {offsets = [0, 0, 0], sizes = [2, 8, 8], strides = [1, 1, 1]} : vector<2x8x32xf32> to vector<2x8x8xf32>
    %51 = vector.extract_strided_slice %47 {offsets = [0, 0, 0], sizes = [2, 8, 8], strides = [1, 1, 1]} : vector<2x8x32xf32> to vector<2x8x8xf32>
    %52 = vector.extract_strided_slice %49 {offsets = [0, 0, 0], sizes = [2, 8, 8], strides = [1, 1, 1]} : vector<2x8x32xf32> to vector<2x8x8xf32>
    "tpu.trace_start"() <{level = 10 : i32, message = "bqd,bkd->bqk"}> : () -> ()
    %cst_20 = arith.constant dense<0.000000e+00> : vector<2x8x8xf32>
    %53 = tpu.matmul %50, %51, %cst_20 {dimension_numbers = #tpu.dot_dimension_numbers<[2], [2], [1], [1], [0, 0, 0, 1, 1, 1], [0], [0]>} : vector<2x8x8xf32>, vector<2x8x8xf32>, vector<2x8x8xf32> -> vector<2x8x8xf32>
    "tpu.trace_stop"() : () -> ()
    %cst_21 = arith.constant 0.176776692 : f32
    %54 = vector.broadcast %cst_21 : f32 to vector<2x8x8xf32>
    %55 = arith.mulf %53, %54 : vector<2x8x8xf32>
    %cst_22 = arith.constant -1.000000e+30 : f32
    %56 = vector.shape_cast %14 : vector<1x8x8xi1> to vector<1x8x8xi1>
    %57 = vector.broadcast %56 : vector<1x8x8xi1> to vector<2x8x8xi1>
    %58 = vector.broadcast %cst_22 : f32 to vector<2x8x8xf32>
    %59 = arith.select %57, %55, %58 : vector<2x8x8xi1>, vector<2x8x8xf32>
    %cst_23 = arith.constant dense<0xFF800000> : vector<2x8xf32>
    %60 = vector.multi_reduction <maximumf>, %59, %cst_23 [2] : vector<2x8x8xf32> to vector<2x8xf32>
    %cst_24 = arith.constant 0xFF800000 : f32
    %61 = vector.broadcast %cst_24 : f32 to vector<2x8xf32>
    %62 = arith.maximumf %61, %60 : vector<2x8xf32>
    %63 = vector.shape_cast %62 : vector<2x8xf32> to vector<2x8x1xf32>
    %64 = vector.broadcast %63 : vector<2x8x1xf32> to vector<2x8x8xf32>
    %65 = arith.subf %59, %64 : vector<2x8x8xf32>
    %66 = math.exp %65 : vector<2x8x8xf32>
    %cst_25 = arith.constant dense<0.000000e+00> : vector<2x8xf32>
    %67 = vector.multi_reduction <add>, %66, %cst_25 [2] : vector<2x8x8xf32> to vector<2x8xf32>
    %68 = vector.shape_cast %67 : vector<2x8xf32> to vector<2x8x1xf32>
    %69 = vector.broadcast %68 : vector<2x8x1xf32> to vector<2x8x8xf32>
    %70 = arith.divf %66, %69 : vector<2x8x8xf32>
    "tpu.trace_start"() <{level = 10 : i32, message = "bqk,bkd->bqd"}> : () -> ()
    %cst_26 = arith.constant dense<0.000000e+00> : vector<2x8x8xf32>
    %71 = tpu.matmul %70, %52, %cst_26 {dimension_numbers = #tpu.dot_dimension_numbers<[2], [1], [1], [2], [0, 0, 0, 1, 1, 2], [0], [0]>} : vector<2x8x8xf32>, vector<2x8x8xf32>, vector<2x8x8xf32> -> vector<2x8x8xf32>
    "tpu.trace_stop"() : () -> ()
    %72 = vector.extract_strided_slice %45 {offsets = [0, 0, 8], sizes = [2, 8, 8], strides = [1, 1, 1]} : vector<2x8x32xf32> to vector<2x8x8xf32>
    %73 = vector.extract_strided_slice %47 {offsets = [0, 0, 8], sizes = [2, 8, 8], strides = [1, 1, 1]} : vector<2x8x32xf32> to vector<2x8x8xf32>
    %74 = vector.extract_strided_slice %49 {offsets = [0, 0, 8], sizes = [2, 8, 8], strides = [1, 1, 1]} : vector<2x8x32xf32> to vector<2x8x8xf32>
    "tpu.trace_start"() <{level = 10 : i32, message = "bqd,bkd->bqk"}> : () -> ()
    %cst_27 = arith.constant dense<0.000000e+00> : vector<2x8x8xf32>
    %75 = tpu.matmul %72, %73, %cst_27 {dimension_numbers = #tpu.dot_dimension_numbers<[2], [2], [1], [1], [0, 0, 0, 1, 1, 1], [0], [0]>} : vector<2x8x8xf32>, vector<2x8x8xf32>, vector<2x8x8xf32> -> vector<2x8x8xf32>
    "tpu.trace_stop"() : () -> ()
    %cst_28 = arith.constant 0.176776692 : f32
    %76 = vector.broadcast %cst_28 : f32 to vector<2x8x8xf32>
    %77 = arith.mulf %75, %76 : vector<2x8x8xf32>
    %cst_29 = arith.constant -1.000000e+30 : f32
    %78 = vector.shape_cast %14 : vector<1x8x8xi1> to vector<1x8x8xi1>
    %79 = vector.broadcast %78 : vector<1x8x8xi1> to vector<2x8x8xi1>
    %80 = vector.broadcast %cst_29 : f32 to vector<2x8x8xf32>
    %81 = arith.select %79, %77, %80 : vector<2x8x8xi1>, vector<2x8x8xf32>
    %cst_30 = arith.constant dense<0xFF800000> : vector<2x8xf32>
    %82 = vector.multi_reduction <maximumf>, %81, %cst_30 [2] : vector<2x8x8xf32> to vector<2x8xf32>
    %cst_31 = arith.constant 0xFF800000 : f32
    %83 = vector.broadcast %cst_31 : f32 to vector<2x8xf32>
    %84 = arith.maximumf %83, %82 : vector<2x8xf32>
    %85 = vector.shape_cast %84 : vector<2x8xf32> to vector<2x8x1xf32>
    %86 = vector.broadcast %85 : vector<2x8x1xf32> to vector<2x8x8xf32>
    %87 = arith.subf %81, %86 : vector<2x8x8xf32>
    %88 = math.exp %87 : vector<2x8x8xf32>
    %cst_32 = arith.constant dense<0.000000e+00> : vector<2x8xf32>
    %89 = vector.multi_reduction <add>, %88, %cst_32 [2] : vector<2x8x8xf32> to vector<2x8xf32>
    %90 = vector.shape_cast %89 : vector<2x8xf32> to vector<2x8x1xf32>
    %91 = vector.broadcast %90 : vector<2x8x1xf32> to vector<2x8x8xf32>
    %92 = arith.divf %88, %91 : vector<2x8x8xf32>
    "tpu.trace_start"() <{level = 10 : i32, message = "bqk,bkd->bqd"}> : () -> ()
    %cst_33 = arith.constant dense<0.000000e+00> : vector<2x8x8xf32>
    %93 = tpu.matmul %92, %74, %cst_33 {dimension_numbers = #tpu.dot_dimension_numbers<[2], [1], [1], [2], [0, 0, 0, 1, 1, 2], [0], [0]>} : vector<2x8x8xf32>, vector<2x8x8xf32>, vector<2x8x8xf32> -> vector<2x8x8xf32>
    "tpu.trace_stop"() : () -> ()
    %94 = vector.extract_strided_slice %45 {offsets = [0, 0, 16], sizes = [2, 8, 8], strides = [1, 1, 1]} : vector<2x8x32xf32> to vector<2x8x8xf32>
    %95 = vector.extract_strided_slice %47 {offsets = [0, 0, 16], sizes = [2, 8, 8], strides = [1, 1, 1]} : vector<2x8x32xf32> to vector<2x8x8xf32>
    %96 = vector.extract_strided_slice %49 {offsets = [0, 0, 16], sizes = [2, 8, 8], strides = [1, 1, 1]} : vector<2x8x32xf32> to vector<2x8x8xf32>
    "tpu.trace_start"() <{level = 10 : i32, message = "bqd,bkd->bqk"}> : () -> ()
    %cst_34 = arith.constant dense<0.000000e+00> : vector<2x8x8xf32>
    %97 = tpu.matmul %94, %95, %cst_34 {dimension_numbers = #tpu.dot_dimension_numbers<[2], [2], [1], [1], [0, 0, 0, 1, 1, 1], [0], [0]>} : vector<2x8x8xf32>, vector<2x8x8xf32>, vector<2x8x8xf32> -> vector<2x8x8xf32>
    "tpu.trace_stop"() : () -> ()
    %cst_35 = arith.constant 0.176776692 : f32
    %98 = vector.broadcast %cst_35 : f32 to vector<2x8x8xf32>
    %99 = arith.mulf %97, %98 : vector<2x8x8xf32>
    %cst_36 = arith.constant -1.000000e+30 : f32
    %100 = vector.shape_cast %14 : vector<1x8x8xi1> to vector<1x8x8xi1>
    %101 = vector.broadcast %100 : vector<1x8x8xi1> to vector<2x8x8xi1>
    %102 = vector.broadcast %cst_36 : f32 to vector<2x8x8xf32>
    %103 = arith.select %101, %99, %102 : vector<2x8x8xi1>, vector<2x8x8xf32>
    %cst_37 = arith.constant dense<0xFF800000> : vector<2x8xf32>
    %104 = vector.multi_reduction <maximumf>, %103, %cst_37 [2] : vector<2x8x8xf32> to vector<2x8xf32>
    %cst_38 = arith.constant 0xFF800000 : f32
    %105 = vector.broadcast %cst_38 : f32 to vector<2x8xf32>
    %106 = arith.maximumf %105, %104 : vector<2x8xf32>
    %107 = vector.shape_cast %106 : vector<2x8xf32> to vector<2x8x1xf32>
    %108 = vector.broadcast %107 : vector<2x8x1xf32> to vector<2x8x8xf32>
    %109 = arith.subf %103, %108 : vector<2x8x8xf32>
    %110 = math.exp %109 : vector<2x8x8xf32>
    %cst_39 = arith.constant dense<0.000000e+00> : vector<2x8xf32>
    %111 = vector.multi_reduction <add>, %110, %cst_39 [2] : vector<2x8x8xf32> to vector<2x8xf32>
    %112 = vector.shape_cast %111 : vector<2x8xf32> to vector<2x8x1xf32>
    %113 = vector.broadcast %112 : vector<2x8x1xf32> to vector<2x8x8xf32>
    %114 = arith.divf %110, %113 : vector<2x8x8xf32>
    "tpu.trace_start"() <{level = 10 : i32, message = "bqk,bkd->bqd"}> : () -> ()
    %cst_40 = arith.constant dense<0.000000e+00> : vector<2x8x8xf32>
    %115 = tpu.matmul %114, %96, %cst_40 {dimension_numbers = #tpu.dot_dimension_numbers<[2], [1], [1], [2], [0, 0, 0, 1, 1, 2], [0], [0]>} : vector<2x8x8xf32>, vector<2x8x8xf32>, vector<2x8x8xf32> -> vector<2x8x8xf32>
    "tpu.trace_stop"() : () -> ()
    %116 = vector.extract_strided_slice %45 {offsets = [0, 0, 24], sizes = [2, 8, 8], strides = [1, 1, 1]} : vector<2x8x32xf32> to vector<2x8x8xf32>
    %117 = vector.extract_strided_slice %47 {offsets = [0, 0, 24], sizes = [2, 8, 8], strides = [1, 1, 1]} : vector<2x8x32xf32> to vector<2x8x8xf32>
    %118 = vector.extract_strided_slice %49 {offsets = [0, 0, 24], sizes = [2, 8, 8], strides = [1, 1, 1]} : vector<2x8x32xf32> to vector<2x8x8xf32>
    "tpu.trace_start"() <{level = 10 : i32, message = "bqd,bkd->bqk"}> : () -> ()
    %cst_41 = arith.constant dense<0.000000e+00> : vector<2x8x8xf32>
    %119 = tpu.matmul %116, %117, %cst_41 {dimension_numbers = #tpu.dot_dimension_numbers<[2], [2], [1], [1], [0, 0, 0, 1, 1, 1], [0], [0]>} : vector<2x8x8xf32>, vector<2x8x8xf32>, vector<2x8x8xf32> -> vector<2x8x8xf32>
    "tpu.trace_stop"() : () -> ()
    %cst_42 = arith.constant 0.176776692 : f32
    %120 = vector.broadcast %cst_42 : f32 to vector<2x8x8xf32>
    %121 = arith.mulf %119, %120 : vector<2x8x8xf32>
    %cst_43 = arith.constant -1.000000e+30 : f32
    %122 = vector.shape_cast %14 : vector<1x8x8xi1> to vector<1x8x8xi1>
    %123 = vector.broadcast %122 : vector<1x8x8xi1> to vector<2x8x8xi1>
    %124 = vector.broadcast %cst_43 : f32 to vector<2x8x8xf32>
    %125 = arith.select %123, %121, %124 : vector<2x8x8xi1>, vector<2x8x8xf32>
    %cst_44 = arith.constant dense<0xFF800000> : vector<2x8xf32>
    %126 = vector.multi_reduction <maximumf>, %125, %cst_44 [2] : vector<2x8x8xf32> to vector<2x8xf32>
    %cst_45 = arith.constant 0xFF800000 : f32
    %127 = vector.broadcast %cst_45 : f32 to vector<2x8xf32>
    %128 = arith.maximumf %127, %126 : vector<2x8xf32>
    %129 = vector.shape_cast %128 : vector<2x8xf32> to vector<2x8x1xf32>
    %130 = vector.broadcast %129 : vector<2x8x1xf32> to vector<2x8x8xf32>
    %131 = arith.subf %125, %130 : vector<2x8x8xf32>
    %132 = math.exp %131 : vector<2x8x8xf32>
    %cst_46 = arith.constant dense<0.000000e+00> : vector<2x8xf32>
    %133 = vector.multi_reduction <add>, %132, %cst_46 [2] : vector<2x8x8xf32> to vector<2x8xf32>
    %134 = vector.shape_cast %133 : vector<2x8xf32> to vector<2x8x1xf32>
    %135 = vector.broadcast %134 : vector<2x8x1xf32> to vector<2x8x8xf32>
    %136 = arith.divf %132, %135 : vector<2x8x8xf32>
    "tpu.trace_start"() <{level = 10 : i32, message = "bqk,bkd->bqd"}> : () -> ()
    %cst_47 = arith.constant dense<0.000000e+00> : vector<2x8x8xf32>
    %137 = tpu.matmul %136, %118, %cst_47 {dimension_numbers = #tpu.dot_dimension_numbers<[2], [1], [1], [2], [0, 0, 0, 1, 1, 2], [0], [0]>} : vector<2x8x8xf32>, vector<2x8x8xf32>, vector<2x8x8xf32> -> vector<2x8x8xf32>
    "tpu.trace_stop"() : () -> ()
    %138 = tpu.concatenate %71, %93, %115, %137 in 2 : vector<2x8x8xf32>, vector<2x8x8xf32>, vector<2x8x8xf32>, vector<2x8x8xf32> -> vector<2x8x32xf32>
    %139 = vector.shape_cast %138 : vector<2x8x32xf32> to vector<16x32xf32>
    %c0_48 = arith.constant 0 : index
    %c0_49 = arith.constant 0 : index
    %c0_50 = arith.constant 0 : index
    %140 = vector.load %arg6[%c0_48, %c0_49, %c0_50] : memref<2x32x32xf32, #tpu.memory_space<vmem>>, vector<1x32x32xf32>
    %141 = vector.shape_cast %140 : vector<1x32x32xf32> to vector<32x32xf32>
    %cst_51 = arith.constant dense<0.000000e+00> : vector<16x32xf32>
    %142 = tpu.matmul %139, %141, %cst_51 {dimension_numbers = #tpu.dot_dimension_numbers<[1], [0], [0], [1], [0, 0, 1, 1], [], []>} : vector<16x32xf32>, vector<32x32xf32>, vector<16x32xf32> -> vector<16x32xf32>
    %c0_52 = arith.constant 0 : index
    %c0_53 = arith.constant 0 : index
    %c0_54 = arith.constant 0 : index
    %143 = vector.load %arg7[%c0_52, %c0_53, %c0_54] : memref<2x1x32xf32, #tpu.memory_space<vmem>>, vector<1x1x32xf32>
    %144 = vector.shape_cast %143 : vector<1x1x32xf32> to vector<1x32xf32>
    %145 = vector.broadcast %144 : vector<1x32xf32> to vector<16x32xf32>
    %146 = arith.addf %142, %145 : vector<16x32xf32>
    %147 = arith.addf %10, %146 : vector<16x32xf32>
    %c0_55 = arith.constant 0 : index
    %c0_56 = arith.constant 0 : index
    %c0_57 = arith.constant 0 : index
    %148 = vector.load %arg8[%c0_55, %c0_56, %c0_57] : memref<2x1x32xf32, #tpu.memory_space<vmem>>, vector<1x1x32xf32>
    %149 = vector.shape_cast %148 : vector<1x1x32xf32> to vector<1x32xf32>
    %c0_58 = arith.constant 0 : index
    %c0_59 = arith.constant 0 : index
    %c0_60 = arith.constant 0 : index
    %150 = vector.load %arg9[%c0_58, %c0_59, %c0_60] : memref<2x1x32xf32, #tpu.memory_space<vmem>>, vector<1x1x32xf32>
    %151 = vector.shape_cast %150 : vector<1x1x32xf32> to vector<1x32xf32>
    %cst_61 = arith.constant dense<0.000000e+00> : vector<16xf32>
    %152 = vector.multi_reduction <add>, %147, %cst_61 [1] : vector<16x32xf32> to vector<16xf32>
    %153 = vector.shape_cast %152 : vector<16xf32> to vector<16x1xf32>
    %cst_62 = arith.constant 3.200000e+01 : f32
    %154 = vector.broadcast %cst_62 : f32 to vector<16x1xf32>
    %155 = arith.divf %153, %154 : vector<16x1xf32>
    %156 = vector.broadcast %155 : vector<16x1xf32> to vector<16x32xf32>
    %157 = arith.subf %147, %156 : vector<16x32xf32>
    %158 = arith.mulf %157, %157 : vector<16x32xf32>
    %cst_63 = arith.constant dense<0.000000e+00> : vector<16xf32>
    %159 = vector.multi_reduction <add>, %158, %cst_63 [1] : vector<16x32xf32> to vector<16xf32>
    %160 = vector.shape_cast %159 : vector<16xf32> to vector<16x1xf32>
    %cst_64 = arith.constant 3.200000e+01 : f32
    %161 = vector.broadcast %cst_64 : f32 to vector<16x1xf32>
    %162 = arith.divf %160, %161 : vector<16x1xf32>
    %163 = vector.broadcast %155 : vector<16x1xf32> to vector<16x32xf32>
    %164 = arith.subf %147, %163 : vector<16x32xf32>
    %cst_65 = arith.constant 9.99999974E-6 : f32
    %165 = vector.broadcast %cst_65 : f32 to vector<16x1xf32>
    %166 = arith.addf %162, %165 : vector<16x1xf32>
    %167 = math.rsqrt %166 : vector<16x1xf32>
    %168 = vector.broadcast %167 : vector<16x1xf32> to vector<16x32xf32>
    %169 = arith.mulf %164, %168 : vector<16x32xf32>
    %170 = vector.broadcast %149 : vector<1x32xf32> to vector<16x32xf32>
    %171 = arith.mulf %169, %170 : vector<16x32xf32>
    %172 = vector.broadcast %151 : vector<1x32xf32> to vector<16x32xf32>
    %173 = arith.addf %171, %172 : vector<16x32xf32>
    %c0_66 = arith.constant 0 : index
    %c0_67 = arith.constant 0 : index
    %c0_68 = arith.constant 0 : index
    %174 = vector.load %arg10[%c0_66, %c0_67, %c0_68] : memref<2x32x128xf32, #tpu.memory_space<vmem>>, vector<1x32x128xf32>
    %175 = vector.shape_cast %174 : vector<1x32x128xf32> to vector<32x128xf32>
    %cst_69 = arith.constant dense<0.000000e+00> : vector<16x128xf32>
    %176 = tpu.matmul %173, %175, %cst_69 {dimension_numbers = #tpu.dot_dimension_numbers<[1], [0], [0], [1], [0, 0, 1, 1], [], []>} : vector<16x32xf32>, vector<32x128xf32>, vector<16x128xf32> -> vector<16x128xf32>
    %c0_70 = arith.constant 0 : index
    %c0_71 = arith.constant 0 : index
    %c0_72 = arith.constant 0 : index
    %177 = vector.load %arg11[%c0_70, %c0_71, %c0_72] : memref<2x1x128xf32, #tpu.memory_space<vmem>>, vector<1x1x128xf32>
    %178 = vector.shape_cast %177 : vector<1x1x128xf32> to vector<1x128xf32>
    %179 = vector.broadcast %178 : vector<1x128xf32> to vector<16x128xf32>
    %180 = arith.addf %176, %179 : vector<16x128xf32>
    %cst_73 = arith.constant 0.000000e+00 : f32
    %181 = vector.broadcast %cst_73 : f32 to vector<16x128xf32>
    %182 = arith.maximumf %180, %181 : vector<16x128xf32>
    %c0_74 = arith.constant 0 : index
    %c0_75 = arith.constant 0 : index
    %c0_76 = arith.constant 0 : index
    %183 = vector.load %arg12[%c0_74, %c0_75, %c0_76] : memref<2x128x32xf32, #tpu.memory_space<vmem>>, vector<1x128x32xf32>
    %184 = vector.shape_cast %183 : vector<1x128x32xf32> to vector<128x32xf32>
    %cst_77 = arith.constant dense<0.000000e+00> : vector<16x32xf32>
    %185 = tpu.matmul %182, %184, %cst_77 {dimension_numbers = #tpu.dot_dimension_numbers<[1], [0], [0], [1], [0, 0, 1, 1], [], []>} : vector<16x128xf32>, vector<128x32xf32>, vector<16x32xf32> -> vector<16x32xf32>
    %c0_78 = arith.constant 0 : index
    %c0_79 = arith.constant 0 : index
    %c0_80 = arith.constant 0 : index
    %186 = vector.load %arg13[%c0_78, %c0_79, %c0_80] : memref<2x1x32xf32, #tpu.memory_space<vmem>>, vector<1x1x32xf32>
    %187 = vector.shape_cast %186 : vector<1x1x32xf32> to vector<1x32xf32>
    %188 = vector.broadcast %187 : vector<1x32xf32> to vector<16x32xf32>
    %189 = arith.addf %185, %188 : vector<16x32xf32>
    %190 = arith.addf %147, %189 : vector<16x32xf32>
    %c1 = arith.constant 1 : index
    %c0_81 = arith.constant 0 : index
    %c0_82 = arith.constant 0 : index
    %191 = vector.load %arg3[%c1, %c0_81, %c0_82] : memref<2x1x32xf32, #tpu.memory_space<vmem>>, vector<1x1x32xf32>
    %192 = vector.shape_cast %191 : vector<1x1x32xf32> to vector<1x32xf32>
    %c1_83 = arith.constant 1 : index
    %c0_84 = arith.constant 0 : index
    %c0_85 = arith.constant 0 : index
    %193 = vector.load %arg4[%c1_83, %c0_84, %c0_85] : memref<2x1x32xf32, #tpu.memory_space<vmem>>, vector<1x1x32xf32>
    %194 = vector.shape_cast %193 : vector<1x1x32xf32> to vector<1x32xf32>
    %cst_86 = arith.constant dense<0.000000e+00> : vector<16xf32>
    %195 = vector.multi_reduction <add>, %190, %cst_86 [1] : vector<16x32xf32> to vector<16xf32>
    %196 = vector.shape_cast %195 : vector<16xf32> to vector<16x1xf32>
    %cst_87 = arith.constant 3.200000e+01 : f32
    %197 = vector.broadcast %cst_87 : f32 to vector<16x1xf32>
    %198 = arith.divf %196, %197 : vector<16x1xf32>
    %199 = vector.broadcast %198 : vector<16x1xf32> to vector<16x32xf32>
    %200 = arith.subf %190, %199 : vector<16x32xf32>
    %201 = arith.mulf %200, %200 : vector<16x32xf32>
    %cst_88 = arith.constant dense<0.000000e+00> : vector<16xf32>
    %202 = vector.multi_reduction <add>, %201, %cst_88 [1] : vector<16x32xf32> to vector<16xf32>
    %203 = vector.shape_cast %202 : vector<16xf32> to vector<16x1xf32>
    %cst_89 = arith.constant 3.200000e+01 : f32
    %204 = vector.broadcast %cst_89 : f32 to vector<16x1xf32>
    %205 = arith.divf %203, %204 : vector<16x1xf32>
    %206 = vector.broadcast %198 : vector<16x1xf32> to vector<16x32xf32>
    %207 = arith.subf %190, %206 : vector<16x32xf32>
    %cst_90 = arith.constant 9.99999974E-6 : f32
    %208 = vector.broadcast %cst_90 : f32 to vector<16x1xf32>
    %209 = arith.addf %205, %208 : vector<16x1xf32>
    %210 = math.rsqrt %209 : vector<16x1xf32>
    %211 = vector.broadcast %210 : vector<16x1xf32> to vector<16x32xf32>
    %212 = arith.mulf %207, %211 : vector<16x32xf32>
    %213 = vector.broadcast %192 : vector<1x32xf32> to vector<16x32xf32>
    %214 = arith.mulf %212, %213 : vector<16x32xf32>
    %215 = vector.broadcast %194 : vector<1x32xf32> to vector<16x32xf32>
    %216 = arith.addf %214, %215 : vector<16x32xf32>
    %c1_91 = arith.constant 1 : index
    %c0_92 = arith.constant 0 : index
    %c0_93 = arith.constant 0 : index
    %217 = vector.load %arg5[%c1_91, %c0_92, %c0_93] : memref<2x32x96xf32, #tpu.memory_space<vmem>>, vector<1x32x96xf32>
    %218 = vector.shape_cast %217 : vector<1x32x96xf32> to vector<32x96xf32>
    %cst_94 = arith.constant dense<0.000000e+00> : vector<16x96xf32>
    %219 = tpu.matmul %216, %218, %cst_94 {dimension_numbers = #tpu.dot_dimension_numbers<[1], [0], [0], [1], [0, 0, 1, 1], [], []>} : vector<16x32xf32>, vector<32x96xf32>, vector<16x96xf32> -> vector<16x96xf32>
    %220 = vector.extract_strided_slice %219 {offsets = [0, 0], sizes = [16, 32], strides = [1, 1]} : vector<16x96xf32> to vector<16x32xf32>
    %221 = vector.shape_cast %220 : vector<16x32xf32> to vector<2x8x32xf32>
    %222 = vector.extract_strided_slice %219 {offsets = [0, 32], sizes = [16, 32], strides = [1, 1]} : vector<16x96xf32> to vector<16x32xf32>
    %223 = vector.shape_cast %222 : vector<16x32xf32> to vector<2x8x32xf32>
    %224 = vector.extract_strided_slice %219 {offsets = [0, 64], sizes = [16, 32], strides = [1, 1]} : vector<16x96xf32> to vector<16x32xf32>
    %225 = vector.shape_cast %224 : vector<16x32xf32> to vector<2x8x32xf32>
    %226 = vector.extract_strided_slice %221 {offsets = [0, 0, 0], sizes = [2, 8, 8], strides = [1, 1, 1]} : vector<2x8x32xf32> to vector<2x8x8xf32>
    %227 = vector.extract_strided_slice %223 {offsets = [0, 0, 0], sizes = [2, 8, 8], strides = [1, 1, 1]} : vector<2x8x32xf32> to vector<2x8x8xf32>
    %228 = vector.extract_strided_slice %225 {offsets = [0, 0, 0], sizes = [2, 8, 8], strides = [1, 1, 1]} : vector<2x8x32xf32> to vector<2x8x8xf32>
    "tpu.trace_start"() <{level = 10 : i32, message = "bqd,bkd->bqk"}> : () -> ()
    %cst_95 = arith.constant dense<0.000000e+00> : vector<2x8x8xf32>
    %229 = tpu.matmul %226, %227, %cst_95 {dimension_numbers = #tpu.dot_dimension_numbers<[2], [2], [1], [1], [0, 0, 0, 1, 1, 1], [0], [0]>} : vector<2x8x8xf32>, vector<2x8x8xf32>, vector<2x8x8xf32> -> vector<2x8x8xf32>
    "tpu.trace_stop"() : () -> ()
    %cst_96 = arith.constant 0.176776692 : f32
    %230 = vector.broadcast %cst_96 : f32 to vector<2x8x8xf32>
    %231 = arith.mulf %229, %230 : vector<2x8x8xf32>
    %cst_97 = arith.constant -1.000000e+30 : f32
    %232 = vector.shape_cast %14 : vector<1x8x8xi1> to vector<1x8x8xi1>
    %233 = vector.broadcast %232 : vector<1x8x8xi1> to vector<2x8x8xi1>
    %234 = vector.broadcast %cst_97 : f32 to vector<2x8x8xf32>
    %235 = arith.select %233, %231, %234 : vector<2x8x8xi1>, vector<2x8x8xf32>
    %cst_98 = arith.constant dense<0xFF800000> : vector<2x8xf32>
    %236 = vector.multi_reduction <maximumf>, %235, %cst_98 [2] : vector<2x8x8xf32> to vector<2x8xf32>
    %cst_99 = arith.constant 0xFF800000 : f32
    %237 = vector.broadcast %cst_99 : f32 to vector<2x8xf32>
    %238 = arith.maximumf %237, %236 : vector<2x8xf32>
    %239 = vector.shape_cast %238 : vector<2x8xf32> to vector<2x8x1xf32>
    %240 = vector.broadcast %239 : vector<2x8x1xf32> to vector<2x8x8xf32>
    %241 = arith.subf %235, %240 : vector<2x8x8xf32>
    %242 = math.exp %241 : vector<2x8x8xf32>
    %cst_100 = arith.constant dense<0.000000e+00> : vector<2x8xf32>
    %243 = vector.multi_reduction <add>, %242, %cst_100 [2] : vector<2x8x8xf32> to vector<2x8xf32>
    %244 = vector.shape_cast %243 : vector<2x8xf32> to vector<2x8x1xf32>
    %245 = vector.broadcast %244 : vector<2x8x1xf32> to vector<2x8x8xf32>
    %246 = arith.divf %242, %245 : vector<2x8x8xf32>
    "tpu.trace_start"() <{level = 10 : i32, message = "bqk,bkd->bqd"}> : () -> ()
    %cst_101 = arith.constant dense<0.000000e+00> : vector<2x8x8xf32>
    %247 = tpu.matmul %246, %228, %cst_101 {dimension_numbers = #tpu.dot_dimension_numbers<[2], [1], [1], [2], [0, 0, 0, 1, 1, 2], [0], [0]>} : vector<2x8x8xf32>, vector<2x8x8xf32>, vector<2x8x8xf32> -> vector<2x8x8xf32>
    "tpu.trace_stop"() : () -> ()
    %248 = vector.extract_strided_slice %221 {offsets = [0, 0, 8], sizes = [2, 8, 8], strides = [1, 1, 1]} : vector<2x8x32xf32> to vector<2x8x8xf32>
    %249 = vector.extract_strided_slice %223 {offsets = [0, 0, 8], sizes = [2, 8, 8], strides = [1, 1, 1]} : vector<2x8x32xf32> to vector<2x8x8xf32>
    %250 = vector.extract_strided_slice %225 {offsets = [0, 0, 8], sizes = [2, 8, 8], strides = [1, 1, 1]} : vector<2x8x32xf32> to vector<2x8x8xf32>
    "tpu.trace_start"() <{level = 10 : i32, message = "bqd,bkd->bqk"}> : () -> ()
    %cst_102 = arith.constant dense<0.000000e+00> : vector<2x8x8xf32>
    %251 = tpu.matmul %248, %249, %cst_102 {dimension_numbers = #tpu.dot_dimension_numbers<[2], [2], [1], [1], [0, 0, 0, 1, 1, 1], [0], [0]>} : vector<2x8x8xf32>, vector<2x8x8xf32>, vector<2x8x8xf32> -> vector<2x8x8xf32>
    "tpu.trace_stop"() : () -> ()
    %cst_103 = arith.constant 0.176776692 : f32
    %252 = vector.broadcast %cst_103 : f32 to vector<2x8x8xf32>
    %253 = arith.mulf %251, %252 : vector<2x8x8xf32>
    %cst_104 = arith.constant -1.000000e+30 : f32
    %254 = vector.shape_cast %14 : vector<1x8x8xi1> to vector<1x8x8xi1>
    %255 = vector.broadcast %254 : vector<1x8x8xi1> to vector<2x8x8xi1>
    %256 = vector.broadcast %cst_104 : f32 to vector<2x8x8xf32>
    %257 = arith.select %255, %253, %256 : vector<2x8x8xi1>, vector<2x8x8xf32>
    %cst_105 = arith.constant dense<0xFF800000> : vector<2x8xf32>
    %258 = vector.multi_reduction <maximumf>, %257, %cst_105 [2] : vector<2x8x8xf32> to vector<2x8xf32>
    %cst_106 = arith.constant 0xFF800000 : f32
    %259 = vector.broadcast %cst_106 : f32 to vector<2x8xf32>
    %260 = arith.maximumf %259, %258 : vector<2x8xf32>
    %261 = vector.shape_cast %260 : vector<2x8xf32> to vector<2x8x1xf32>
    %262 = vector.broadcast %261 : vector<2x8x1xf32> to vector<2x8x8xf32>
    %263 = arith.subf %257, %262 : vector<2x8x8xf32>
    %264 = math.exp %263 : vector<2x8x8xf32>
    %cst_107 = arith.constant dense<0.000000e+00> : vector<2x8xf32>
    %265 = vector.multi_reduction <add>, %264, %cst_107 [2] : vector<2x8x8xf32> to vector<2x8xf32>
    %266 = vector.shape_cast %265 : vector<2x8xf32> to vector<2x8x1xf32>
    %267 = vector.broadcast %266 : vector<2x8x1xf32> to vector<2x8x8xf32>
    %268 = arith.divf %264, %267 : vector<2x8x8xf32>
    "tpu.trace_start"() <{level = 10 : i32, message = "bqk,bkd->bqd"}> : () -> ()
    %cst_108 = arith.constant dense<0.000000e+00> : vector<2x8x8xf32>
    %269 = tpu.matmul %268, %250, %cst_108 {dimension_numbers = #tpu.dot_dimension_numbers<[2], [1], [1], [2], [0, 0, 0, 1, 1, 2], [0], [0]>} : vector<2x8x8xf32>, vector<2x8x8xf32>, vector<2x8x8xf32> -> vector<2x8x8xf32>
    "tpu.trace_stop"() : () -> ()
    %270 = vector.extract_strided_slice %221 {offsets = [0, 0, 16], sizes = [2, 8, 8], strides = [1, 1, 1]} : vector<2x8x32xf32> to vector<2x8x8xf32>
    %271 = vector.extract_strided_slice %223 {offsets = [0, 0, 16], sizes = [2, 8, 8], strides = [1, 1, 1]} : vector<2x8x32xf32> to vector<2x8x8xf32>
    %272 = vector.extract_strided_slice %225 {offsets = [0, 0, 16], sizes = [2, 8, 8], strides = [1, 1, 1]} : vector<2x8x32xf32> to vector<2x8x8xf32>
    "tpu.trace_start"() <{level = 10 : i32, message = "bqd,bkd->bqk"}> : () -> ()
    %cst_109 = arith.constant dense<0.000000e+00> : vector<2x8x8xf32>
    %273 = tpu.matmul %270, %271, %cst_109 {dimension_numbers = #tpu.dot_dimension_numbers<[2], [2], [1], [1], [0, 0, 0, 1, 1, 1], [0], [0]>} : vector<2x8x8xf32>, vector<2x8x8xf32>, vector<2x8x8xf32> -> vector<2x8x8xf32>
    "tpu.trace_stop"() : () -> ()
    %cst_110 = arith.constant 0.176776692 : f32
    %274 = vector.broadcast %cst_110 : f32 to vector<2x8x8xf32>
    %275 = arith.mulf %273, %274 : vector<2x8x8xf32>
    %cst_111 = arith.constant -1.000000e+30 : f32
    %276 = vector.shape_cast %14 : vector<1x8x8xi1> to vector<1x8x8xi1>
    %277 = vector.broadcast %276 : vector<1x8x8xi1> to vector<2x8x8xi1>
    %278 = vector.broadcast %cst_111 : f32 to vector<2x8x8xf32>
    %279 = arith.select %277, %275, %278 : vector<2x8x8xi1>, vector<2x8x8xf32>
    %cst_112 = arith.constant dense<0xFF800000> : vector<2x8xf32>
    %280 = vector.multi_reduction <maximumf>, %279, %cst_112 [2] : vector<2x8x8xf32> to vector<2x8xf32>
    %cst_113 = arith.constant 0xFF800000 : f32
    %281 = vector.broadcast %cst_113 : f32 to vector<2x8xf32>
    %282 = arith.maximumf %281, %280 : vector<2x8xf32>
    %283 = vector.shape_cast %282 : vector<2x8xf32> to vector<2x8x1xf32>
    %284 = vector.broadcast %283 : vector<2x8x1xf32> to vector<2x8x8xf32>
    %285 = arith.subf %279, %284 : vector<2x8x8xf32>
    %286 = math.exp %285 : vector<2x8x8xf32>
    %cst_114 = arith.constant dense<0.000000e+00> : vector<2x8xf32>
    %287 = vector.multi_reduction <add>, %286, %cst_114 [2] : vector<2x8x8xf32> to vector<2x8xf32>
    %288 = vector.shape_cast %287 : vector<2x8xf32> to vector<2x8x1xf32>
    %289 = vector.broadcast %288 : vector<2x8x1xf32> to vector<2x8x8xf32>
    %290 = arith.divf %286, %289 : vector<2x8x8xf32>
    "tpu.trace_start"() <{level = 10 : i32, message = "bqk,bkd->bqd"}> : () -> ()
    %cst_115 = arith.constant dense<0.000000e+00> : vector<2x8x8xf32>
    %291 = tpu.matmul %290, %272, %cst_115 {dimension_numbers = #tpu.dot_dimension_numbers<[2], [1], [1], [2], [0, 0, 0, 1, 1, 2], [0], [0]>} : vector<2x8x8xf32>, vector<2x8x8xf32>, vector<2x8x8xf32> -> vector<2x8x8xf32>
    "tpu.trace_stop"() : () -> ()
    %292 = vector.extract_strided_slice %221 {offsets = [0, 0, 24], sizes = [2, 8, 8], strides = [1, 1, 1]} : vector<2x8x32xf32> to vector<2x8x8xf32>
    %293 = vector.extract_strided_slice %223 {offsets = [0, 0, 24], sizes = [2, 8, 8], strides = [1, 1, 1]} : vector<2x8x32xf32> to vector<2x8x8xf32>
    %294 = vector.extract_strided_slice %225 {offsets = [0, 0, 24], sizes = [2, 8, 8], strides = [1, 1, 1]} : vector<2x8x32xf32> to vector<2x8x8xf32>
    "tpu.trace_start"() <{level = 10 : i32, message = "bqd,bkd->bqk"}> : () -> ()
    %cst_116 = arith.constant dense<0.000000e+00> : vector<2x8x8xf32>
    %295 = tpu.matmul %292, %293, %cst_116 {dimension_numbers = #tpu.dot_dimension_numbers<[2], [2], [1], [1], [0, 0, 0, 1, 1, 1], [0], [0]>} : vector<2x8x8xf32>, vector<2x8x8xf32>, vector<2x8x8xf32> -> vector<2x8x8xf32>
    "tpu.trace_stop"() : () -> ()
    %cst_117 = arith.constant 0.176776692 : f32
    %296 = vector.broadcast %cst_117 : f32 to vector<2x8x8xf32>
    %297 = arith.mulf %295, %296 : vector<2x8x8xf32>
    %cst_118 = arith.constant -1.000000e+30 : f32
    %298 = vector.shape_cast %14 : vector<1x8x8xi1> to vector<1x8x8xi1>
    %299 = vector.broadcast %298 : vector<1x8x8xi1> to vector<2x8x8xi1>
    %300 = vector.broadcast %cst_118 : f32 to vector<2x8x8xf32>
    %301 = arith.select %299, %297, %300 : vector<2x8x8xi1>, vector<2x8x8xf32>
    %cst_119 = arith.constant dense<0xFF800000> : vector<2x8xf32>
    %302 = vector.multi_reduction <maximumf>, %301, %cst_119 [2] : vector<2x8x8xf32> to vector<2x8xf32>
    %cst_120 = arith.constant 0xFF800000 : f32
    %303 = vector.broadcast %cst_120 : f32 to vector<2x8xf32>
    %304 = arith.maximumf %303, %302 : vector<2x8xf32>
    %305 = vector.shape_cast %304 : vector<2x8xf32> to vector<2x8x1xf32>
    %306 = vector.broadcast %305 : vector<2x8x1xf32> to vector<2x8x8xf32>
    %307 = arith.subf %301, %306 : vector<2x8x8xf32>
    %308 = math.exp %307 : vector<2x8x8xf32>
    %cst_121 = arith.constant dense<0.000000e+00> : vector<2x8xf32>
    %309 = vector.multi_reduction <add>, %308, %cst_121 [2] : vector<2x8x8xf32> to vector<2x8xf32>
    %310 = vector.shape_cast %309 : vector<2x8xf32> to vector<2x8x1xf32>
    %311 = vector.broadcast %310 : vector<2x8x1xf32> to vector<2x8x8xf32>
    %312 = arith.divf %308, %311 : vector<2x8x8xf32>
    "tpu.trace_start"() <{level = 10 : i32, message = "bqk,bkd->bqd"}> : () -> ()
    %cst_122 = arith.constant dense<0.000000e+00> : vector<2x8x8xf32>
    %313 = tpu.matmul %312, %294, %cst_122 {dimension_numbers = #tpu.dot_dimension_numbers<[2], [1], [1], [2], [0, 0, 0, 1, 1, 2], [0], [0]>} : vector<2x8x8xf32>, vector<2x8x8xf32>, vector<2x8x8xf32> -> vector<2x8x8xf32>
    "tpu.trace_stop"() : () -> ()
    %314 = tpu.concatenate %247, %269, %291, %313 in 2 : vector<2x8x8xf32>, vector<2x8x8xf32>, vector<2x8x8xf32>, vector<2x8x8xf32> -> vector<2x8x32xf32>
    %315 = vector.shape_cast %314 : vector<2x8x32xf32> to vector<16x32xf32>
    %c1_123 = arith.constant 1 : index
    %c0_124 = arith.constant 0 : index
    %c0_125 = arith.constant 0 : index
    %316 = vector.load %arg6[%c1_123, %c0_124, %c0_125] : memref<2x32x32xf32, #tpu.memory_space<vmem>>, vector<1x32x32xf32>
    %317 = vector.shape_cast %316 : vector<1x32x32xf32> to vector<32x32xf32>
    %cst_126 = arith.constant dense<0.000000e+00> : vector<16x32xf32>
    %318 = tpu.matmul %315, %317, %cst_126 {dimension_numbers = #tpu.dot_dimension_numbers<[1], [0], [0], [1], [0, 0, 1, 1], [], []>} : vector<16x32xf32>, vector<32x32xf32>, vector<16x32xf32> -> vector<16x32xf32>
    %c1_127 = arith.constant 1 : index
    %c0_128 = arith.constant 0 : index
    %c0_129 = arith.constant 0 : index
    %319 = vector.load %arg7[%c1_127, %c0_128, %c0_129] : memref<2x1x32xf32, #tpu.memory_space<vmem>>, vector<1x1x32xf32>
    %320 = vector.shape_cast %319 : vector<1x1x32xf32> to vector<1x32xf32>
    %321 = vector.broadcast %320 : vector<1x32xf32> to vector<16x32xf32>
    %322 = arith.addf %318, %321 : vector<16x32xf32>
    %323 = arith.addf %190, %322 : vector<16x32xf32>
    %c1_130 = arith.constant 1 : index
    %c0_131 = arith.constant 0 : index
    %c0_132 = arith.constant 0 : index
    %324 = vector.load %arg8[%c1_130, %c0_131, %c0_132] : memref<2x1x32xf32, #tpu.memory_space<vmem>>, vector<1x1x32xf32>
    %325 = vector.shape_cast %324 : vector<1x1x32xf32> to vector<1x32xf32>
    %c1_133 = arith.constant 1 : index
    %c0_134 = arith.constant 0 : index
    %c0_135 = arith.constant 0 : index
    %326 = vector.load %arg9[%c1_133, %c0_134, %c0_135] : memref<2x1x32xf32, #tpu.memory_space<vmem>>, vector<1x1x32xf32>
    %327 = vector.shape_cast %326 : vector<1x1x32xf32> to vector<1x32xf32>
    %cst_136 = arith.constant dense<0.000000e+00> : vector<16xf32>
    %328 = vector.multi_reduction <add>, %323, %cst_136 [1] : vector<16x32xf32> to vector<16xf32>
    %329 = vector.shape_cast %328 : vector<16xf32> to vector<16x1xf32>
    %cst_137 = arith.constant 3.200000e+01 : f32
    %330 = vector.broadcast %cst_137 : f32 to vector<16x1xf32>
    %331 = arith.divf %329, %330 : vector<16x1xf32>
    %332 = vector.broadcast %331 : vector<16x1xf32> to vector<16x32xf32>
    %333 = arith.subf %323, %332 : vector<16x32xf32>
    %334 = arith.mulf %333, %333 : vector<16x32xf32>
    %cst_138 = arith.constant dense<0.000000e+00> : vector<16xf32>
    %335 = vector.multi_reduction <add>, %334, %cst_138 [1] : vector<16x32xf32> to vector<16xf32>
    %336 = vector.shape_cast %335 : vector<16xf32> to vector<16x1xf32>
    %cst_139 = arith.constant 3.200000e+01 : f32
    %337 = vector.broadcast %cst_139 : f32 to vector<16x1xf32>
    %338 = arith.divf %336, %337 : vector<16x1xf32>
    %339 = vector.broadcast %331 : vector<16x1xf32> to vector<16x32xf32>
    %340 = arith.subf %323, %339 : vector<16x32xf32>
    %cst_140 = arith.constant 9.99999974E-6 : f32
    %341 = vector.broadcast %cst_140 : f32 to vector<16x1xf32>
    %342 = arith.addf %338, %341 : vector<16x1xf32>
    %343 = math.rsqrt %342 : vector<16x1xf32>
    %344 = vector.broadcast %343 : vector<16x1xf32> to vector<16x32xf32>
    %345 = arith.mulf %340, %344 : vector<16x32xf32>
    %346 = vector.broadcast %325 : vector<1x32xf32> to vector<16x32xf32>
    %347 = arith.mulf %345, %346 : vector<16x32xf32>
    %348 = vector.broadcast %327 : vector<1x32xf32> to vector<16x32xf32>
    %349 = arith.addf %347, %348 : vector<16x32xf32>
    %c1_141 = arith.constant 1 : index
    %c0_142 = arith.constant 0 : index
    %c0_143 = arith.constant 0 : index
    %350 = vector.load %arg10[%c1_141, %c0_142, %c0_143] : memref<2x32x128xf32, #tpu.memory_space<vmem>>, vector<1x32x128xf32>
    %351 = vector.shape_cast %350 : vector<1x32x128xf32> to vector<32x128xf32>
    %cst_144 = arith.constant dense<0.000000e+00> : vector<16x128xf32>
    %352 = tpu.matmul %349, %351, %cst_144 {dimension_numbers = #tpu.dot_dimension_numbers<[1], [0], [0], [1], [0, 0, 1, 1], [], []>} : vector<16x32xf32>, vector<32x128xf32>, vector<16x128xf32> -> vector<16x128xf32>
    %c1_145 = arith.constant 1 : index
    %c0_146 = arith.constant 0 : index
    %c0_147 = arith.constant 0 : index
    %353 = vector.load %arg11[%c1_145, %c0_146, %c0_147] : memref<2x1x128xf32, #tpu.memory_space<vmem>>, vector<1x1x128xf32>
    %354 = vector.shape_cast %353 : vector<1x1x128xf32> to vector<1x128xf32>
    %355 = vector.broadcast %354 : vector<1x128xf32> to vector<16x128xf32>
    %356 = arith.addf %352, %355 : vector<16x128xf32>
    %cst_148 = arith.constant 0.000000e+00 : f32
    %357 = vector.broadcast %cst_148 : f32 to vector<16x128xf32>
    %358 = arith.maximumf %356, %357 : vector<16x128xf32>
    %c1_149 = arith.constant 1 : index
    %c0_150 = arith.constant 0 : index
    %c0_151 = arith.constant 0 : index
    %359 = vector.load %arg12[%c1_149, %c0_150, %c0_151] : memref<2x128x32xf32, #tpu.memory_space<vmem>>, vector<1x128x32xf32>
    %360 = vector.shape_cast %359 : vector<1x128x32xf32> to vector<128x32xf32>
    %cst_152 = arith.constant dense<0.000000e+00> : vector<16x32xf32>
    %361 = tpu.matmul %358, %360, %cst_152 {dimension_numbers = #tpu.dot_dimension_numbers<[1], [0], [0], [1], [0, 0, 1, 1], [], []>} : vector<16x128xf32>, vector<128x32xf32>, vector<16x32xf32> -> vector<16x32xf32>
    %c1_153 = arith.constant 1 : index
    %c0_154 = arith.constant 0 : index
    %c0_155 = arith.constant 0 : index
    %362 = vector.load %arg13[%c1_153, %c0_154, %c0_155] : memref<2x1x32xf32, #tpu.memory_space<vmem>>, vector<1x1x32xf32>
    %363 = vector.shape_cast %362 : vector<1x1x32xf32> to vector<1x32xf32>
    %364 = vector.broadcast %363 : vector<1x32xf32> to vector<16x32xf32>
    %365 = arith.addf %361, %364 : vector<16x32xf32>
    %366 = arith.addf %323, %365 : vector<16x32xf32>
    %c0_156 = arith.constant 0 : index
    %c0_157 = arith.constant 0 : index
    %367 = vector.load %arg14[%c0_156, %c0_157] : memref<1x32xf32, #tpu.memory_space<vmem>>, vector<1x32xf32>
    %c0_158 = arith.constant 0 : index
    %c0_159 = arith.constant 0 : index
    %368 = vector.load %arg15[%c0_158, %c0_159] : memref<1x32xf32, #tpu.memory_space<vmem>>, vector<1x32xf32>
    %cst_160 = arith.constant dense<0.000000e+00> : vector<16xf32>
    %369 = vector.multi_reduction <add>, %366, %cst_160 [1] : vector<16x32xf32> to vector<16xf32>
    %370 = vector.shape_cast %369 : vector<16xf32> to vector<16x1xf32>
    %cst_161 = arith.constant 3.200000e+01 : f32
    %371 = vector.broadcast %cst_161 : f32 to vector<16x1xf32>
    %372 = arith.divf %370, %371 : vector<16x1xf32>
    %373 = vector.broadcast %372 : vector<16x1xf32> to vector<16x32xf32>
    %374 = arith.subf %366, %373 : vector<16x32xf32>
    %375 = arith.mulf %374, %374 : vector<16x32xf32>
    %cst_162 = arith.constant dense<0.000000e+00> : vector<16xf32>
    %376 = vector.multi_reduction <add>, %375, %cst_162 [1] : vector<16x32xf32> to vector<16xf32>
    %377 = vector.shape_cast %376 : vector<16xf32> to vector<16x1xf32>
    %cst_163 = arith.constant 3.200000e+01 : f32
    %378 = vector.broadcast %cst_163 : f32 to vector<16x1xf32>
    %379 = arith.divf %377, %378 : vector<16x1xf32>
    %380 = vector.broadcast %372 : vector<16x1xf32> to vector<16x32xf32>
    %381 = arith.subf %366, %380 : vector<16x32xf32>
    %cst_164 = arith.constant 9.99999974E-6 : f32
    %382 = vector.broadcast %cst_164 : f32 to vector<16x1xf32>
    %383 = arith.addf %379, %382 : vector<16x1xf32>
    %384 = math.rsqrt %383 : vector<16x1xf32>
    %385 = vector.broadcast %384 : vector<16x1xf32> to vector<16x32xf32>
    %386 = arith.mulf %381, %385 : vector<16x32xf32>
    %387 = vector.broadcast %367 : vector<1x32xf32> to vector<16x32xf32>
    %388 = arith.mulf %386, %387 : vector<16x32xf32>
    %389 = vector.broadcast %368 : vector<1x32xf32> to vector<16x32xf32>
    %390 = arith.addf %388, %389 : vector<16x32xf32>
    %c0_165 = arith.constant 0 : index
    %c0_166 = arith.constant 0 : index
    %391 = vector.load %arg16[%c0_165, %c0_166] : memref<32x64xf32, #tpu.memory_space<vmem>>, vector<32x64xf32>
    %cst_167 = arith.constant dense<0.000000e+00> : vector<16x64xf32>
    %392 = tpu.matmul %390, %391, %cst_167 {dimension_numbers = #tpu.dot_dimension_numbers<[1], [0], [0], [1], [0, 0, 1, 1], [], []>} : vector<16x32xf32>, vector<32x64xf32>, vector<16x64xf32> -> vector<16x64xf32>
    %c0_168 = arith.constant 0 : index
    %c0_169 = arith.constant 0 : index
    %393 = vector.load %arg17[%c0_168, %c0_169] : memref<1x64xf32, #tpu.memory_space<vmem>>, vector<1x64xf32>
    %394 = vector.broadcast %393 : vector<1x64xf32> to vector<16x64xf32>
    %395 = arith.addf %392, %394 : vector<16x64xf32>
    %396 = vector.shape_cast %395 : vector<16x64xf32> to vector<2x8x64xf32>
    %c0_170 = arith.constant 0 : index
    %c0_171 = arith.constant 0 : index
    %c0_172 = arith.constant 0 : index
    %397 = vector.load %arg18[%c0_170, %c0_171, %c0_172] : memref<2x8x64xf32, #tpu.memory_space<vmem>>, vector<2x8x64xf32>
    tpu.vector_store %arg18[%c0_170, %c0_171, %c0_172], %396 {strides = array<i32>} : memref<2x8x64xf32, #tpu.memory_space<vmem>>, vector<2x8x64xf32>,
    return
  }
}

</mosaic_0001>

<bundles_post_ra>
// kernel: bigram_forward.1
= control target key start
LH: loop header
LB: loop body
LE: loop exit
PB: predicated region body
PF: predicated region fallthrough
CT: control target
= control target key end

     0   :  { %s5710_s0 = inlined_call_operand.vmem [shape: s32[16,1], index: 0, kind: input, shape index: {}]   ;;  %s5711_s1 = inlined_call_operand.vmem [shape: f32[64,32], index: 1, kind: input, shape index: {}]   ;;  %s5712_s2 = inlined_call_operand.vmem [shape: f32[16,32], index: 2, kind: input, shape index: {}]   ;;  %s5713_s3 = inlined_call_operand.vmem [shape: f32[2,1,32], index: 3, kind: input, shape index: {}]   ;;  %s5714_s4 = inlined_call_operand.vmem [shape: f32[2,1,32], index: 4, kind: input, shape index: {}]   ;;  %s5715_s5 = inlined_call_operand.vmem [shape: f32[2,32,96], index: 5, kind: input, shape index: {}]   ;;  %s5716_s6 = inlined_call_operand.vmem [shape: f32[2,32,32], index: 6, kind: input, shape index: {}]   ;;  %s5717_s7 = inlined_call_operand.vmem [shape: f32[2,1,32], index: 7, kind: input, shape index: {}]   ;;  %s5718_s8 = inlined_call_operand.vmem [shape: f32[2,1,32], index: 8, kind: input, shape index: {}]   ;;  %s5719_s9 = inlined_call_operand.vmem [shape: f32[2,1,32], index: 9, kind: input, shape index: {}]   ;;  %s5720_s10 = inlined_call_operand.vmem [shape: f32[2,32,128], index: 10, kind: input, shape index: {}]   ;;  %s5721_s11 = inlined_call_operand.vmem [shape: f32[2,1,128], index: 11, kind: input, shape index: {}]   ;;  %s5722_s12 = inlined_call_operand.vmem [shape: f32[2,128,32], index: 12, kind: input, shape index: {}]   ;;  %s5723_s13 = inlined_call_operand.vmem [shape: f32[2,1,32], index: 13, kind: input, shape index: {}]   ;;  %s5724_s14 = inlined_call_operand.vmem [shape: f32[1,32], index: 14, kind: input, shape index: {}]   ;;  %s5725_s15 = inlined_call_operand.vmem [shape: f32[1,32], index: 15, kind: input, shape index: {}]   ;;  %s5726_s16 = inlined_call_operand.vmem [shape: f32[32,64], index: 16, kind: input, shape index: {}]   ;;  %s5727_s17 = inlined_call_operand.vmem [shape: f32[1,64], index: 17, kind: input, shape index: {}]   ;;  %s5728_s18 = inlined_call_operand.hbm [shape: f32[2,8,64], index: 18, kind: output, shape index: {}]  }
   0x1   :  { %5748 = sst [smem:[#allocation5_spill]] %s5710_s0 }
   0x2   :  { %5749 = sst [smem:[#allocation6_spill]] %s5711_s1 }
   0x3   :  { %5750 = sst [smem:[#allocation7_spill]] %s5712_s2 }
   0x4   :  { %5751 = sst [smem:[#allocation8_spill]] %s5723_s13 }
   0x5   :  { %s5752_s29 = sld [smem:[#allocation5_spill]]  ;;  %s5753_s13 = sld [smem:[#allocation6_spill]]  ;;  %v4852_v2 = vmov 0   ;;  %v4853_v11 = vmov 0.0  }
   0x6   :  { %4743 = vset.pattern.permute.xlu0 %v4852_v2  ;;  %4292 = vmatprep.subr.mxu0 %v4853_v11 }
   0xb   :  { %v60_v0 = vld [vmem:[%s5752_s29] sm:$0xff]  ;;  %v77_v3 = vld [vmem:[%s5753_s13 + $0x8] sm:$0xff]  ;;  %v78_v4 = vld [vmem:[%s5753_s13 + $0x10] sm:$0xff] }
   0xc   :  { %v76_v1 = vld [vmem:[%s5753_s13] sm:$0xff]  ;;  %v79_v5 = vld [vmem:[%s5753_s13 + $0x18] sm:$0xff]  ;;  %65 = vperm.xlu0 %4743, %v60_v0   ;;  %v61_v6 = vld [vmem:[%s5752_s29 + $0x8] sm:$0xff] }
   0xd   :  { %v4588_v7 = vpack.c.bf16 %v77_v3, %v76_v1  ;;  %v4592_v8 = vpack.c.bf16 %v79_v5, %v78_v4  ;;  %v80_v9 = vld [vmem:[%s5753_s13 + $0x20] sm:$0xff]  ;;  %v81_v10 = vld [vmem:[%s5753_s13 + $0x28] sm:$0xff] }
   0xe   :  { %23 = vsyncpa [#allocation3], 0  ;;  %v4596_v12 = vpack.c.bf16 %v81_v10, %v80_v9  ;;  %v82_v13 = vld [vmem:[%s5753_s13 + $0x30] sm:$0xff]  ;;  %v83_v14 = vld [vmem:[%s5753_s13 + $0x38] sm:$0xff]  ;;  %v62_v16 = vlaneseq  ;;  %vm85_vm0 = vcmask 523264   ;;  %s5754_s20 = sld [smem:[#allocation7_spill]] }
   0xf   :  { %4589 = vmatprep.subr.bf16.mxu1 %v4588_v7  ;;  %v4600_v15 = vpack.c.bf16 %v83_v14, %v82_v13  ;;  %vm172_vm3 = vcmask 261120   ;;  %v216_v39 = vld [vmem:[%s5715_s5] sm:$0xff]  ;;  %v217_v40 = vld [vmem:[%s5715_s5 + $0x8] sm:$0xff]  ;;  %v218_v41 = vld [vmem:[%s5715_s5 + $0x10] sm:$0xff]  ;;  %vm4854_vm4 = vmmov 0   ;;  %s4855_s19 = smov 96  }
  0x10   :  { %4591 = vmatpush3.bf16.msra.mxu1 %v4588_v7  ;;  %68 = vperm.xlu0 %4743, %v61_v6   ;;  %v4998_v17 = vand.u32 127, %v62_v16  ;;  %v4604_v42 = vpack.c.bf16 %v217_v40, %v216_v39  ;;  %v219_v43 = vld [vmem:[%s5715_s5 + $0x18] sm:$0xff]  ;;  %v3996_v52 = vld [vmem:[%s5713_s3] ss:$0 sm:$0xff]  ;;  %vm304_vm5 = vcmask 64512   ;;  %v168_v1 = vshrl.u32 %v62_v16, 7 }
  0x11   :  { %4593 = vmatprep.subr.bf16.mxu1 %v4592_v8  ;;  %v4608_v44 = vpack.c.bf16 %v219_v43, %v218_v41  ;;  %v3997_v54 = vld [vmem:[%s5714_s4] ss:$0 sm:$0xff]  ;;  %4294 = vmatprep.mubr.msk.f32.mxu0 %vm4854_vm4, %v4853_v11  ;;  %s4856_s13 = smov 64   ;;  %s4857_s1 = smov 88   ;;  %vm1664_vm7 = vcmask 130048   ;;  %vm1667_vm8 = vcmask 195584  }
  0x12   :  { %vm5068_vm6 = vcmp.ge.s32.totalorder %v168_v1, %v4998_v17  ;;  %s4859_s21 = smov 56   ;;  %s4860_s22 = smov 80  }
  0x13   :  { %s5746_s2 = smov 112   ;;  %s5744_s23 = smov 48  }
  0x14   :  { %4595 = vmatpush3.bf16.msra.mxu1 %v4592_v8  ;;  %v84_v22 = vld [vmem:[%s5754_s20] sm:$0xff]  ;;  %s4858_s20 = smov 120   ;;  %s5740_s24 = smov 72  }
  0x15   :  { %4597 = vmatprep.subr.bf16.mxu1 %v4596_v12  ;;  %s5738_s25 = smov 104   ;;  %s5736_s26 = smov 40  }
  0x16   :  { %s5734_s27 = smov 8   ;;  %s5732_s28 = smov 16  }
  0x17   :  { %s5742_s29 = smov 24  }
  0x18   :  { %4599 = vmatpush3.bf16.msra.mxu1 %v4596_v12 }
  0x19   :  { %4601 = vmatprep.subr.bf16.mxu1 %v4600_v15 }
  0x1c   :  { %4603 = vmatpush3.bf16.msra.mxu1 %v4600_v15 }
  0x1d   :  { %4605 = vmatprep.subr.bf16.mxu1 %v4604_v42 }
  0x8b   :  { %v66_v18 = vpop.permute.xlu0 %65 }
  0x8c   :  { %vm70_vm1 = vcmp.eq.s32.totalorder %v66_v18, %v4998_v17 }
  0x8d   :  { %v3992_v19 = vsel %vm70_vm1, 1.0, %v4853_v11 }
  0x8e   :  { %4278 = vmatprep.mubr.msk.f32.mxu1 %vm85_vm0, %v3992_v19 }
  0x8f   :  { %v69_v20 = vpop.permute.xlu0 %68 }
  0x90   :  { %vm71_vm2 = vcmp.eq.s32.totalorder %v69_v20, %v4998_v17 }
  0x91   :  { %v3993_v21 = vsel %vm71_vm2, 1.0, %v4853_v11 }
  0x92   :  { %4279 = vmatmul.mubr.msk.f32.vlgmr.msra.gmra.mrb[0].mxu1 %vm85_vm0, %v3993_v21 }
  0x93   :  { %4607 = vmatpush3.bf16.msra.mxu1 %v4604_v42 }
  0x94   :  { %4609 = vmatprep.subr.bf16.mxu1 %v4608_v44 }
  0x97   :  { %4611 = vmatpush3.bf16.msra.mxu1 %v4608_v44 }
  0x98   :  { %4297 = vmatprep.subr.mxu1 %v4853_v11 }
 0x165   :  { %v4280_v23 = vpop.f32.mrb[0].mxu1 }
 0x166   :  { %v158_v24 = vpop.f32.mrb[1].mxu1  ;;  %v5011_v26 = vadd.f32 %v4280_v23, %v84_v22 }
 0x167   :  { %v5009_v25 = vadd.f32 %v158_v24, %v84_v22 }
 0x168   :  { %v176_v28 = vsel %vm172_vm3, %v5011_v26, 0.0 }
 0x169   :  { %v173_v27 = vsel %vm172_vm3, %v5009_v25, 0.0 }
 0x16a   :  { %174 = vadd.xlane.f32.xlu1 %v173_v27 }
 0x16e   :  { %177 = vadd.xlane.f32.xlu1 %v176_v28 }
 0x1f7   :  { %v175_v29 = vpop.xlane.xlu1 %174 }
 0x1f8   :  { %v180_v30 = vmul.f32 0.03125, %v175_v29 }
 0x1fa   :  { %v182_v31 = vsub.f32 %v5009_v25, %v180_v30 }
 0x1fb   :  { %v178_v32 = vpop.xlane.xlu1 %177 }
 0x1fc   :  { %v181_v33 = vmul.f32 0.03125, %v178_v32  ;;  %v184_v34 = vmul.f32 %v182_v31, %v182_v31 }
 0x1fe   :  { %v183_v35 = vsub.f32 %v5011_v26, %v181_v33  ;;  %v186_v36 = vsel %vm172_vm3, %v184_v34, 0.0 }
 0x1ff   :  { %187 = vadd.xlane.f32.xlu0 %v186_v36 }
 0x200   :  { %v185_v37 = vmul.f32 %v183_v35, %v183_v35 }
 0x202   :  { %v189_v38 = vsel %vm172_vm3, %v185_v37, 0.0 }
 0x203   :  { %190 = vadd.xlane.f32.xlu1 %v189_v38 }
 0x28c   :  { %v188_v45 = vpop.xlane.xlu0 %187 }
 0x28d   :  { %v192_v46 = vmul.f32 0.03125, %v188_v45 }
 0x28f   :  { %v194_v47 = vadd.f32 1e-05, %v192_v46 }
 0x290   :  { %v191_v48 = vpop.xlane.xlu1 %190 }
 0x291   :  { %4744 = vrsqrt.f32 %v194_v47  ;;  %v193_v49 = vmul.f32 0.03125, %v191_v48 }
 0x293   :  { %v195_v50 = vadd.f32 1e-05, %v193_v49 }
 0x295   :  { %4746 = vrsqrt.f32 %v195_v50 }
 0x29b   :  { %v4745_v51 = vpop.eup %4744 }
 0x29c   :  { %v198_v53 = vmul.f32 %v4745_v51, %v182_v31 }
 0x29e   :  { %v206_v55 = vmul.f32 %v3996_v52, %v198_v53 }
 0x29f   :  { %v4747_v56 = vpop.eup %4746 }
 0x2a0   :  { %v199_v57 = vmul.f32 %v4747_v56, %v183_v35  ;;  %v214_v58 = vadd.f32 %v3997_v54, %v206_v55 }
 0x2a2   :  { %v207_v59 = vmul.f32 %v3996_v52, %v199_v57  ;;  %4289 = vmatprep.mubr.msk.f32.mxu1 %vm172_vm3, %v214_v58 }
 0x2a4   :  { %v215_v60 = vadd.f32 %v3997_v54, %v207_v59 }
 0x2a6   :  { %4290 = vmatmul.mubr.msk.f32.vlgmr.msra.gmra.mrb[2].mxu1 %vm172_vm3, %v215_v60 }
 0x2a7   :  { %4299 = vmatprep.mubr.msk.f32.mxu1 %vm4854_vm4, %v4853_v11 }
 0x379   :  { %v5046_v61 = vpop.f32.mrb[2].mxu1 }
 0x37a   :  { %v5048_v62 = vpop.f32.mrb[3].mxu1 }
 0x37b   :  { %302 = vrot.lane.b32.xlu1 %v5048_v62, %s4855_s19 }
 0x37f   :  { %380 = vrot.lane.b32.xlu1 %v5046_v61, %s4855_s19 }
 0x3ed   :  { %v303_v63 = vpop.permute.xlu1 %302 }
 0x3ee   :  { %4293 = vmatpush3.xpose.msk.msra.mxu0 %vm304_vm5, %v303_v63 }
 0x3ef   :  { %4302 = vmatprep.subr.mxu0 %v4853_v11 }
 0x3f1   :  { %4295 = vmatmul.mubr.msk.f32.vlgmr.msra.gmra.mrb[0].mxu0 %vm304_vm5, %v5048_v62  ;;  %v381_v0 = vpop.permute.xlu1 %380 }
 0x3f2   :  { %4298 = vmatpush3.xpose.msk.msra.mxu1 %vm304_vm5, %v381_v0  ;;  %4304 = vmatprep.mubr.msk.f32.mxu0 %vm4854_vm4, %v4853_v11 }
 0x3f3   :  { %4307 = vmatprep.subr.mxu1 %v4853_v11 }
 0x3f5   :  { %4300 = vmatmul.mubr.msk.f32.vlgmr.msra.gmra.mrb[4].mxu1 %vm304_vm5, %v5046_v61 }
 0x3f6   :  { %4309 = vmatprep.mubr.msk.f32.mxu1 %vm4854_vm4, %v4853_v11 }
 0x4c4   :  { %v375_v3 = vpop.f32.mrb[0].mxu0 }
 0x4c5   :  { %v456_v4 = vmul.f32 0.17677669, %v375_v3  ;;  %v4296_v5 = vpop.f32.mrb[1].mxu0 }
 0x4c7   :  { %v460_v6 = vsel %vm5068_vm6, %v456_v4, -1e+30 }
 0x4c8   :  { %v452_v7 = vpop.f32.mrb[4].mxu1  ;;  %v462_v8 = vsel %vm304_vm5, %v460_v6, -inf }
 0x4c9   :  { %v457_v9 = vmul.f32 0.17677669, %v452_v7  ;;  %463 = vmax.xlane.f32.xlu1 %v462_v8  ;;  %v4301_v10 = vpop.f32.mrb[5].mxu1 }
 0x4cb   :  { %v461_v12 = vsel %vm5068_vm6, %v457_v9, -1e+30 }
 0x4cc   :  { %v465_v13 = vsel %vm304_vm5, %v461_v12, -inf }
 0x4cd   :  { %466 = vmax.xlane.f32.xlu0 %v465_v13 }
 0x4da   :  { %560 = vrot.lane.b32.xlu1 %v5046_v61, %s4856_s13 }
 0x4e3   :  { %484 = vrot.lane.b32.xlu0 %v5048_v62, %s4856_s13 }
 0x4e7   :  { %638 = vrot.lane.b32.xlu0 %v5048_v62, %s4857_s1 }
 0x4eb   :  { %716 = vrot.lane.b32.xlu0 %v5046_v61, %s4857_s1 }
 0x556   :  { %v464_v14 = vpop.xlane.xlu1 %463 }
 0x557   :  { %v468_v15 = vsub.f32 %v460_v6, %v464_v14 }
 0x559   :  { %v470_v19 = vmul.f32 1.442695, %v468_v15 }
 0x55a   :  { %v467_v16 = vpop.xlane.xlu0 %466  ;;  %v561_v17 = vpop.permute.xlu1 %560 }
 0x55b   :  { %v469_v18 = vsub.f32 %v461_v12, %v467_v16  ;;  %4308 = vmatpush3.msra.mxu1 %v561_v17 }
 0x55c   :  { %4317 = vmatprep.subr.mxu1 %v4853_v11 }
 0x55d   :  { %v472_v20 = vmul.f32 1.442695, %v469_v18 }
 0x55e   :  { %v485_v21 = vpop.permute.xlu0 %484 }
 0x55f   :  { %4748 = vpow2.f32 %v472_v20  ;;  %4303 = vmatpush3.msra.mxu0 %v485_v21 }
 0x560   :  { %4312 = vmatprep.subr.mxu0 %v4853_v11  ;;  %4750 = vpow2.f32 %v470_v19 }
 0x562   :  { %v639_v28 = vpop.permute.xlu0 %638 }
 0x566   :  { %v717_v29 = vpop.permute.xlu0 %716 }
 0x569   :  { %v4749_v22 = vpop.eup %4748 }
 0x56a   :  { %v477_v23 = vsel %vm304_vm5, %v4749_v22, 0.0  ;;  %v4751_v24 = vpop.eup %4750 }
 0x56b   :  { %478 = vadd.xlane.f32.xlu0 %v477_v23  ;;  %v474_v27 = vsel %vm304_vm5, %v4751_v24, 0.0 }
 0x56f   :  { %475 = vadd.xlane.f32.xlu0 %v474_v27 }
 0x585   :  { %636 = vrot.lane.b32.xlu0 %v5048_v62, %s4858_s20 }
 0x589   :  { %714 = vrot.lane.b32.xlu0 %v5046_v61, %s4858_s20 }
 0x5f8   :  { %v479_v30 = vpop.xlane.xlu0 %478 }
 0x5f9   :  { %4752 = vrcp.f32 %v479_v30 }
 0x5fc   :  { %v476_v31 = vpop.xlane.xlu0 %475 }
 0x5fd   :  { %4754 = vrcp.f32 %v476_v31 }
 0x600   :  { %v637_v33 = vpop.permute.xlu0 %636 }
 0x603   :  { %v4753_v32 = vpop.eup %4752 }
 0x604   :  { %v483_v34 = vmul.f32 %v4753_v32, %v4749_v22  ;;  %v715_v37 = vpop.permute.xlu0 %714 }
 0x606   :  { %4310 = vmatmul.mubr.msk.f32.vlgmr.msra.gmra.mrb[6].mxu1 %vm304_vm5, %v483_v34 }
 0x607   :  { %v4755_v35 = vpop.eup %4754  ;;  %4318 = vmatpush3.xpose.msk.msra.mxu1 %vm304_vm5, %v717_v29  ;;  %4319 = vmatprep.mubr.msk.f32.mxu1 %vm4854_vm4, %v4853_v11 }
 0x608   :  { %v481_v36 = vmul.f32 %v4755_v35, %v4751_v24  ;;  %4327 = vmatprep.subr.mxu1 %v4853_v11 }
 0x60a   :  { %4305 = vmatmul.mubr.msk.f32.vlgmr.msra.gmra.mrb[2].mxu0 %vm304_vm5, %v481_v36  ;;  %4320 = vmatmul.mubr.msk.f32.vlgmr.msra.gmra.mrb[8].mxu1 %vm304_vm5, %v715_v37 }
 0x60b   :  { %4313 = vmatpush3.xpose.msk.msra.mxu0 %vm304_vm5, %v639_v28  ;;  %4314 = vmatprep.mubr.msk.f32.mxu0 %vm4854_vm4, %v4853_v11 }
 0x60c   :  { %4322 = vmatprep.subr.mxu0 %v4853_v11  ;;  %4329 = vmatprep.mubr.msk.f32.mxu1 %vm4854_vm4, %v4853_v11 }
 0x60e   :  { %4315 = vmatmul.mubr.msk.f32.vlgmr.msra.gmra.mrb[4].mxu0 %vm304_vm5, %v637_v33 }
 0x60f   :  { %4324 = vmatprep.mubr.msk.f32.mxu0 %vm4854_vm4, %v4853_v11 }
 0x6d9   :  { %v5110_v38 = vpop.f32.mrb[6].mxu1 }
 0x6da   :  { %v4311_v39 = vpop.f32.mrb[7].mxu1 }
 0x6dd   :  { %v5112_v40 = vpop.f32.mrb[2].mxu0  ;;  %v788_v41 = vpop.f32.mrb[8].mxu1 }
 0x6de   :  { %v793_v42 = vmul.f32 0.17677669, %v788_v41  ;;  %v4306_v43 = vpop.f32.mrb[3].mxu0  ;;  %v4321_v44 = vpop.f32.mrb[9].mxu1 }
 0x6e0   :  { %v795_v45 = vsel %vm5068_vm6, %v793_v42, -1e+30 }
 0x6e1   :  { %v710_v46 = vpop.f32.mrb[4].mxu0  ;;  %v799_v47 = vsel %vm304_vm5, %v795_v45, -inf }
 0x6e2   :  { %v792_v48 = vmul.f32 0.17677669, %v710_v46  ;;  %v4316_v49 = vpop.f32.mrb[5].mxu0  ;;  %800 = vmax.xlane.f32.xlu0 %v799_v47 }
 0x6e4   :  { %v794_v50 = vsel %vm5068_vm6, %v792_v48, -1e+30 }
 0x6e5   :  { %v796_v51 = vsel %vm304_vm5, %v794_v50, -inf }
 0x6e6   :  { %797 = vmax.xlane.f32.xlu1 %v796_v51 }
 0x6f7   :  { %894 = vrot.lane.b32.xlu1 %v5046_v61, %s4859_s21 }
 0x6f8   :  { %818 = vrot.lane.b32.xlu0 %v5048_v62, %s4859_s21 }
 0x6fb   :  { %972 = vrot.lane.b32.xlu1 %v5048_v62, %s4860_s22 }
 0x76f   :  { %v801_v52 = vpop.xlane.xlu0 %800 }
 0x770   :  { %v803_v53 = vsub.f32 %v795_v45, %v801_v52 }
 0x772   :  { %v806_v54 = vmul.f32 1.442695, %v803_v53 }
 0x773   :  { %v819_v55 = vpop.permute.xlu0 %818  ;;  %v798_v56 = vpop.xlane.xlu1 %797 }
 0x774   :  { %4756 = vpow2.f32 %v806_v54  ;;  %v802_v57 = vsub.f32 %v794_v50, %v798_v56  ;;  %4323 = vmatpush3.msra.mxu0 %v819_v55 }
 0x775   :  { %4332 = vmatprep.subr.mxu0 %v4853_v11 }
 0x776   :  { %v804_v58 = vmul.f32 1.442695, %v802_v57 }
 0x777   :  { %v895_v59 = vpop.permute.xlu1 %894 }
 0x778   :  { %4758 = vpow2.f32 %v804_v58  ;;  %4328 = vmatpush3.msra.mxu1 %v895_v59 }
 0x779   :  { %4337 = vmatprep.subr.mxu1 %v4853_v11 }
 0x77b   :  { %v973_v3 = vpop.permute.xlu1 %972 }
 0x77e   :  { %v4757_v60 = vpop.eup %4756 }
 0x77f   :  { %v811_v63 = vsel %vm304_vm5, %v4757_v60, 0.0 }
 0x780   :  { %812 = vadd.xlane.f32.xlu1 %v811_v63 }
 0x782   :  { %v4759_v0 = vpop.eup %4758 }
 0x783   :  { %v808_v1 = vsel %vm304_vm5, %v4759_v0, 0.0 }
 0x784   :  { %809 = vadd.xlane.f32.xlu0 %v808_v1 }
 0x791   :  { %970 = vrot.lane.b32.xlu1 %v5048_v62, %s5746_s2 }
 0x79a   :  { %1050 = vrot.lane.b32.xlu0 %v5046_v61, %s4860_s22 }
 0x79e   :  { %1048 = vrot.lane.b32.xlu0 %v5046_v61, %s5746_s2 }
 0x80d   :  { %v813_v4 = vpop.xlane.xlu1 %812 }
 0x80e   :  { %4760 = vrcp.f32 %v813_v4 }
 0x811   :  { %v810_v5 = vpop.xlane.xlu0 %809  ;;  %v971_v13 = vpop.permute.xlu1 %970 }
 0x812   :  { %4762 = vrcp.f32 %v810_v5 }
 0x815   :  { %v1051_v7 = vpop.permute.xlu0 %1050 }
 0x818   :  { %v4761_v6 = vpop.eup %4760 }
 0x819   :  { %v817_v8 = vmul.f32 %v4761_v6, %v4757_v60  ;;  %v1049_v12 = vpop.permute.xlu0 %1048 }
 0x81b   :  { %4330 = vmatmul.mubr.msk.f32.vlgmr.msra.gmra.mrb[10].mxu1 %vm304_vm5, %v817_v8 }
 0x81c   :  { %v4763_v9 = vpop.eup %4762  ;;  %4338 = vmatpush3.xpose.msk.msra.mxu1 %vm304_vm5, %v1051_v7  ;;  %4339 = vmatprep.mubr.msk.f32.mxu1 %vm4854_vm4, %v4853_v11 }
 0x81d   :  { %v815_v10 = vmul.f32 %v4763_v9, %v4759_v0  ;;  %4347 = vmatprep.subr.mxu1 %v4853_v11 }
 0x81f   :  { %4325 = vmatmul.mubr.msk.f32.vlgmr.msra.gmra.mrb[6].mxu0 %vm304_vm5, %v815_v10  ;;  %4340 = vmatmul.mubr.msk.f32.vlgmr.msra.gmra.mrb[12].mxu1 %vm304_vm5, %v1049_v12 }
 0x820   :  { %4333 = vmatpush3.xpose.msk.msra.mxu0 %vm304_vm5, %v973_v3  ;;  %4334 = vmatprep.mubr.msk.f32.mxu0 %vm4854_vm4, %v4853_v11 }
 0x821   :  { %4342 = vmatprep.subr.mxu0 %v4853_v11  ;;  %4349 = vmatprep.mubr.msk.f32.mxu1 %vm4854_vm4, %v4853_v11 }
 0x823   :  { %4335 = vmatmul.mubr.msk.f32.vlgmr.msra.gmra.mrb[8].mxu0 %vm304_vm5, %v971_v13 }
 0x824   :  { %4344 = vmatprep.mubr.msk.f32.mxu0 %vm4854_vm4, %v4853_v11 }
 0x8ee   :  { %v5152_v14 = vpop.f32.mrb[10].mxu1 }
 0x8ef   :  { %v4331_v15 = vpop.f32.mrb[11].mxu1 }
 0x8f2   :  { %v5154_v16 = vpop.f32.mrb[6].mxu0  ;;  %v1122_v17 = vpop.f32.mrb[12].mxu1 }
 0x8f3   :  { %v1127_v18 = vmul.f32 0.17677669, %v1122_v17  ;;  %v4326_v19 = vpop.f32.mrb[7].mxu0  ;;  %v4341_v20 = vpop.f32.mrb[13].mxu1 }
 0x8f5   :  { %v1129_v21 = vsel %vm5068_vm6, %v1127_v18, -1e+30 }
 0x8f6   :  { %v1044_v22 = vpop.f32.mrb[8].mxu0  ;;  %v1133_v23 = vsel %vm304_vm5, %v1129_v21, -inf }
 0x8f7   :  { %v1126_v24 = vmul.f32 0.17677669, %v1044_v22  ;;  %1134 = vmax.xlane.f32.xlu0 %v1133_v23  ;;  %v4336_v27 = vpop.f32.mrb[9].mxu0 }
 0x8f9   :  { %v1128_v28 = vsel %vm5068_vm6, %v1126_v24, -1e+30 }
 0x8fa   :  { %v1130_v29 = vsel %vm304_vm5, %v1128_v28, -inf }
 0x8fb   :  { %1131 = vmax.xlane.f32.xlu1 %v1130_v29  ;;  %v1672_v29 = vld [vmem:[%s5716_s6 + $0x10] sm:$0xff] }
 0x90c   :  { %1228 = vrot.lane.b32.xlu1 %v5046_v61, %s5744_s23 }
 0x90d   :  { %1152 = vrot.lane.b32.xlu0 %v5048_v62, %s5744_s23 }
 0x910   :  { %1306 = vrot.lane.b32.xlu1 %v5048_v62, %s5740_s24 }
 0x984   :  { %v1135_v30 = vpop.xlane.xlu0 %1134 }
 0x985   :  { %v1137_v31 = vsub.f32 %v1129_v21, %v1135_v30  ;;  %v1673_v30 = vld [vmem:[%s5716_s6 + $0x18] sm:$0xff] }
 0x987   :  { %v1140_v32 = vmul.f32 1.442695, %v1137_v31  ;;  %v4616_v31 = vpack.c.bf16 %v1673_v30, %v1672_v29  ;;  %v1914_v29 = vld [vmem:[%s5722_s12 + $0x60] sm:$0xff]  ;;  %v1915_v30 = vld [vmem:[%s5722_s12 + $0x68] sm:$0xff] }
 0x988   :  { %v1153_v33 = vpop.permute.xlu0 %1152  ;;  %v1132_v34 = vpop.xlane.xlu1 %1131 }
 0x989   :  { %4764 = vpow2.f32 %v1140_v32  ;;  %v1136_v35 = vsub.f32 %v1128_v28, %v1132_v34  ;;  %4343 = vmatpush3.msra.mxu0 %v1153_v33 }
 0x98a   :  { %4352 = vmatprep.subr.mxu0 %v4853_v11 }
 0x98b   :  { %v1138_v36 = vmul.f32 1.442695, %v1136_v35 }
 0x98c   :  { %v1229_v37 = vpop.permute.xlu1 %1228 }
 0x98d   :  { %4766 = vpow2.f32 %v1138_v36  ;;  %4348 = vmatpush3.msra.mxu1 %v1229_v37 }
 0x98e   :  { %4357 = vmatprep.subr.mxu1 %v4853_v11 }
 0x990   :  { %v1307_v44 = vpop.permute.xlu1 %1306 }
 0x993   :  { %v4765_v39 = vpop.eup %4764 }
 0x994   :  { %v1145_v41 = vsel %vm304_vm5, %v4765_v39, 0.0 }
 0x995   :  { %1146 = vadd.xlane.f32.xlu1 %v1145_v41 }
 0x997   :  { %v4767_v42 = vpop.eup %4766 }
 0x998   :  { %v1142_v43 = vsel %vm304_vm5, %v4767_v42, 0.0 }
 0x999   :  { %1143 = vadd.xlane.f32.xlu0 %v1142_v43 }
 0x9a6   :  { %1304 = vrot.lane.b32.xlu1 %v5048_v62, %s5738_s25 }
 0x9af   :  { %1384 = vrot.lane.b32.xlu0 %v5046_v61, %s5740_s24 }
 0x9b3   :  { %1382 = vrot.lane.b32.xlu0 %v5046_v61, %s5738_s25 }
 0xa22   :  { %v1147_v45 = vpop.xlane.xlu1 %1146 }
 0xa23   :  { %4768 = vrcp.f32 %v1147_v45 }
 0xa26   :  { %v1144_v46 = vpop.xlane.xlu0 %1143  ;;  %v1305_v53 = vpop.permute.xlu1 %1304 }
 0xa27   :  { %4770 = vrcp.f32 %v1144_v46 }
 0xa2a   :  { %v1385_v48 = vpop.permute.xlu0 %1384 }
 0xa2d   :  { %v4769_v47 = vpop.eup %4768 }
 0xa2e   :  { %v1151_v49 = vmul.f32 %v4769_v47, %v4765_v39  ;;  %v1383_v52 = vpop.permute.xlu0 %1382 }
 0xa30   :  { %4350 = vmatmul.mubr.msk.f32.vlgmr.msra.gmra.mrb[14].mxu1 %vm304_vm5, %v1151_v49 }
 0xa31   :  { %v4771_v50 = vpop.eup %4770  ;;  %4358 = vmatpush3.xpose.msk.msra.mxu1 %vm304_vm5, %v1385_v48  ;;  %4359 = vmatprep.mubr.msk.f32.mxu1 %vm4854_vm4, %v4853_v11 }
 0xa32   :  { %v1149_v51 = vmul.f32 %v4771_v50, %v4767_v42  ;;  %4367 = vmatprep.subr.mxu1 %v4853_v11 }
 0xa34   :  { %4345 = vmatmul.mubr.msk.f32.vlgmr.msra.gmra.mrb[10].mxu0 %vm304_vm5, %v1149_v51  ;;  %4360 = vmatmul.mubr.msk.f32.vlgmr.msra.gmra.mrb[16].mxu1 %vm304_vm5, %v1383_v52 }
 0xa35   :  { %4353 = vmatpush3.xpose.msk.msra.mxu0 %vm304_vm5, %v1307_v44  ;;  %4354 = vmatprep.mubr.msk.f32.mxu0 %vm4854_vm4, %v4853_v11 }
 0xa36   :  { %4362 = vmatprep.subr.mxu0 %v4853_v11  ;;  %4369 = vmatprep.mubr.msk.f32.mxu1 %vm4854_vm4, %v4853_v11 }
 0xa38   :  { %4355 = vmatmul.mubr.msk.f32.vlgmr.msra.gmra.mrb[12].mxu0 %vm304_vm5, %v1305_v53 }
 0xa39   :  { %4364 = vmatprep.mubr.msk.f32.mxu0 %vm4854_vm4, %v4853_v11 }
 0xb03   :  { %v1300_v54 = vpop.f32.mrb[14].mxu1 }
 0xb04   :  { %v4351_v55 = vpop.f32.mrb[15].mxu1 }
 0xb07   :  { %v1224_v56 = vpop.f32.mrb[10].mxu0  ;;  %v1456_v57 = vpop.f32.mrb[16].mxu1 }
 0xb08   :  { %v1461_v58 = vmul.f32 0.17677669, %v1456_v57  ;;  %v4346_v59 = vpop.f32.mrb[11].mxu0  ;;  %v4361_v60 = vpop.f32.mrb[17].mxu1 }
 0xb0a   :  { %v1463_v63 = vsel %vm5068_vm6, %v1461_v58, -1e+30 }
 0xb0b   :  { %v1378_v0 = vpop.f32.mrb[12].mxu0  ;;  %v1467_v1 = vsel %vm304_vm5, %v1463_v63, -inf }
 0xb0c   :  { %v1460_v3 = vmul.f32 0.17677669, %v1378_v0  ;;  %1468 = vmax.xlane.f32.xlu0 %v1467_v1  ;;  %v4356_v4 = vpop.f32.mrb[13].mxu0 }
 0xb0d   :  { %v1808_v4 = vld [vmem:[%s5720_s10] sm:$0xff] }
 0xb0e   :  { %v1462_v5 = vsel %vm5068_vm6, %v1460_v3, -1e+30 }
 0xb0f   :  { %v1464_v6 = vsel %vm304_vm5, %v1462_v5, -inf }
 0xb10   :  { %1465 = vmax.xlane.f32.xlu1 %v1464_v6 }
 0xb99   :  { %v1469_v7 = vpop.xlane.xlu0 %1468 }
 0xb9a   :  { %v1471_v8 = vsub.f32 %v1463_v63, %v1469_v7  ;;  %v1810_v7 = vld [vmem:[%s5720_s10 + $0x10] sm:$0xff] }
 0xb9c   :  { %v1474_v9 = vmul.f32 1.442695, %v1471_v8  ;;  %v1811_v8 = vld [vmem:[%s5720_s10 + $0x18] sm:$0xff] }
 0xb9d   :  { %v1466_v10 = vpop.xlane.xlu1 %1465 }
 0xb9e   :  { %4772 = vpow2.f32 %v1474_v9  ;;  %v1470_v12 = vsub.f32 %v1462_v5, %v1466_v10  ;;  %v1809_v5 = vld [vmem:[%s5720_s10 + $0x8] sm:$0xff]  ;;  %v4624_v9 = vpack.c.bf16 %v1811_v8, %v1810_v7  ;;  %v1902_v10 = vld [vmem:[%s5722_s12] sm:$0xff] }
 0xb9f   :  { %v4620_v6 = vpack.c.bf16 %v1809_v5, %v1808_v4 }
 0xba0   :  { %v1472_v13 = vmul.f32 1.442695, %v1470_v12  ;;  %v1903_v12 = vld [vmem:[%s5722_s12 + $0x8] sm:$0xff] }
 0xba2   :  { %4774 = vpow2.f32 %v1472_v13  ;;  %v1904_v13 = vld [vmem:[%s5722_s12 + $0x10] sm:$0xff] }
 0xba8   :  { %v4773_v15 = vpop.eup %4772 }
 0xba9   :  { %v1479_v17 = vsel %vm304_vm5, %v4773_v15, 0.0 }
 0xbaa   :  { %1480 = vadd.xlane.f32.xlu1 %v1479_v17  ;;  %v1905_v17 = vld [vmem:[%s5722_s12 + $0x18] sm:$0xff] }
 0xbac   :  { %v4775_v18 = vpop.eup %4774 }
 0xbad   :  { %v1476_v19 = vsel %vm304_vm5, %v4775_v18, 0.0 }
 0xbae   :  { %1477 = vadd.xlane.f32.xlu0 %v1476_v19  ;;  %v1906_v19 = vld [vmem:[%s5722_s12 + $0x20] sm:$0xff] }
 0xbbb   :  { %1562 = vrot.lane.b32.xlu1 %v5046_v61, %s5736_s26 }
 0xbbf   :  { %1640 = vrot.lane.b32.xlu1 %v5154_v16, %s5734_s27 }
 0xbc3   :  { %1648 = vrot.lane.b32.xlu1 %v1224_v56, %s5732_s28 }
 0xbc4   :  { %1486 = vrot.lane.b32.xlu0 %v5048_v62, %s5736_s26  ;;  %v1670_v62 = vld [vmem:[%s5716_s6] sm:$0xff]  ;;  %s5757_s26 = sld [smem:[#allocation8_spill]] }
 0xbc8   :  { %1642 = vrot.lane.b32.xlu0 %v5152_v14, %s5734_s27  ;;  %v1671_v14 = vld [vmem:[%s5716_s6 + $0x8] sm:$0xff]  ;;  %s5765_s27 = smov 24  }
 0xbc9   :  { %v4612_v28 = vpack.c.bf16 %v1671_v14, %v1670_v62  ;;  %v1912_v62 = vld [vmem:[%s5722_s12 + $0x50] sm:$0xff]  ;;  %v1913_v14 = vld [vmem:[%s5722_s12 + $0x58] sm:$0xff] }
 0xbcc   :  { %1650 = vrot.lane.b32.xlu0 %v1300_v54, %s5732_s28 }
 0xc37   :  { %v1481_v20 = vpop.xlane.xlu1 %1480 }
 0xc38   :  { %4776 = vrcp.f32 %v1481_v20  ;;  %v1907_v20 = vld [vmem:[%s5722_s12 + $0x28] sm:$0xff] }
 0xc3b   :  { %v1478_v21 = vpop.xlane.xlu0 %1477  ;;  %v1563_v22 = vpop.permute.xlu1 %1562 }
 0xc3c   :  { %4778 = vrcp.f32 %v1478_v21  ;;  %4368 = vmatpush3.msra.mxu1 %v1563_v22  ;;  %v4636_v21 = vpack.c.bf16 %v1907_v20, %v1906_v19  ;;  %v1908_v22 = vld [vmem:[%s5722_s12 + $0x30] sm:$0xff] }
 0xc3d   :  { %4621 = vmatprep.subr.bf16.mxu1 %v4620_v6  ;;  %v4039_v20 = vld [vmem:[%s5715_s5 + $0x30] sm:$0xff] }
 0xc3f   :  { %v1487_v61 = vpop.permute.xlu0 %1486  ;;  %v1641_v37 = vpop.permute.xlu1 %1640 }
 0xc40   :  { %4363 = vmatpush3.msra.mxu0 %v1487_v61  ;;  %v1662_v42 = vsel %vm304_vm5, %v5112_v40, %v1641_v37  ;;  %v4024_v40 = vld [vmem:[%s5717_s7] ss:$0 sm:$0xff]  ;;  %v1909_v61 = vld [vmem:[%s5722_s12 + $0x38] sm:$0xff] }
 0xc41   :  { %4613 = vmatprep.subr.bf16.mxu0 %v4612_v28 }
 0xc42   :  { %v4777_v16 = vpop.eup %4776 }
 0xc43   :  { %v1485_v23 = vmul.f32 %v4777_v16, %v4773_v15  ;;  %v1643_v36 = vpop.permute.xlu0 %1642  ;;  %v1649_v41 = vpop.permute.xlu1 %1648  ;;  %v4628_v15 = vpack.c.bf16 %v1903_v12, %v1902_v10  ;;  %v4640_v16 = vpack.c.bf16 %v1909_v61, %v1908_v22 }
 0xc44   :  { %v1663_v44 = vsel %vm304_vm5, %v5110_v38, %v1643_v36  ;;  %v1665_v45 = vsel %vm1664_vm7, %v1662_v42, %v1649_v41  ;;  %v4027_v41 = vld [vmem:[%s5718_s8] ss:$0 sm:$0xff] }
 0xc45   :  { %4370 = vmatmul.mubr.msk.f32.vlgmr.msra.gmra.mrb[18].mxu1 %vm304_vm5, %v1485_v23  ;;  %v1910_v23 = vld [vmem:[%s5722_s12 + $0x40] sm:$0xff] }
 0xc46   :  { %v4779_v24 = vpop.eup %4778  ;;  %4623 = vmatpush3.bf16.msra.mxu1 %v4620_v6 }
 0xc47   :  { %v1483_v27 = vmul.f32 %v4779_v24, %v4775_v18  ;;  %v1651_v39 = vpop.permute.xlu0 %1650  ;;  %4625 = vmatprep.subr.bf16.mxu1 %v4624_v9  ;;  %v4632_v18 = vpack.c.bf16 %v1905_v17, %v1904_v13  ;;  %v1911_v24 = vld [vmem:[%s5722_s12 + $0x48] sm:$0xff]  ;;  %v4037_v17 = vld [vmem:[%s5715_s5 + $0x20] sm:$0xff] }
 0xc48   :  { %v1666_v47 = vsel %vm1664_vm7, %v1663_v44, %v1651_v39 }
 0xc49   :  { %4365 = vmatmul.mubr.msk.f32.vlgmr.msra.gmra.mrb[14].mxu0 %vm304_vm5, %v1483_v27  ;;  %v4644_v27 = vpack.c.bf16 %v1911_v24, %v1910_v23 }
 0xc4a   :  { %4615 = vmatpush3.bf16.msra.mxu0 %v4612_v28  ;;  %4627 = vmatpush3.bf16.msra.mxu1 %v4624_v9  ;;  %v4648_v28 = vpack.c.bf16 %v1913_v14, %v1912_v62 }
 0xc4b   :  { %4617 = vmatprep.subr.bf16.mxu0 %v4616_v31 }
 0xc4e   :  { %4619 = vmatpush3.bf16.msra.mxu0 %v4616_v31  ;;  %v4652_v31 = vpack.c.bf16 %v1915_v30, %v1914_v29 }
 0xc4f   :  { %4629 = vmatprep.subr.bf16.mxu0 %v4628_v15 }
 0xd18   :  { %v1634_v32 = vpop.f32.mrb[18].mxu1 }
 0xd19   :  { %1658 = vrot.lane.b32.xlu0 %v1634_v32, %s5742_s29  ;;  %v4371_v33 = vpop.f32.mrb[19].mxu1 }
 0xd1c   :  { %v1558_v34 = vpop.f32.mrb[14].mxu0 }
 0xd1d   :  { %1656 = vrot.lane.b32.xlu1 %v1558_v34, %s5742_s29  ;;  %v4366_v35 = vpop.f32.mrb[15].mxu0 }
 0xd8b   :  { %v1659_v43 = vpop.permute.xlu0 %1658 }
 0xd8c   :  { %v1669_v49 = vsel %vm1667_vm8, %v1666_v47, %v1659_v43 }
 0xd8f   :  { %v1657_v46 = vpop.permute.xlu1 %1656 }
 0xd90   :  { %v1668_v48 = vsel %vm1667_vm8, %v1665_v45, %v1657_v46  ;;  %v4028_v45 = vld [vmem:[%s5719_s9] ss:$0 sm:$0xff] }
 0xd91   :  { %4380 = vmatprep.mubr.msk.f32.mxu0 %vm172_vm3, %v1668_v48 }
 0xd92   :  { %4381 = vmatmul.mubr.msk.f32.vlgmr.msra.gmra.mrb[16].mxu0 %vm172_vm3, %v1669_v49 }
 0xd93   :  { %4631 = vmatpush3.bf16.msra.mxu0 %v4628_v15 }
 0xd94   :  { %4633 = vmatprep.subr.bf16.mxu0 %v4632_v18 }
 0xd97   :  { %4635 = vmatpush3.bf16.msra.mxu0 %v4632_v18  ;;  %v4038_v18 = vld [vmem:[%s5715_s5 + $0x28] sm:$0xff] }
 0xd98   :  { %4637 = vmatprep.subr.bf16.mxu0 %v4636_v21  ;;  %v4660_v19 = vpack.c.bf16 %v4038_v18, %v4037_v17 }
 0xd9a   :  { %4661 = vmatprep.subr.bf16.mxu1 %v4660_v19 }
 0xd9b   :  { %4639 = vmatpush3.bf16.msra.mxu0 %v4636_v21  ;;  %v4040_v21 = vld [vmem:[%s5715_s5 + $0x38] sm:$0xff] }
 0xd9c   :  { %4641 = vmatprep.subr.bf16.mxu0 %v4640_v16  ;;  %v4664_v22 = vpack.c.bf16 %v4040_v21, %v4039_v20 }
 0xd9f   :  { %4643 = vmatpush3.bf16.msra.mxu0 %v4640_v16 }
 0xda0   :  { %4645 = vmatprep.subr.bf16.mxu0 %v4644_v27 }
 0xda3   :  { %4647 = vmatpush3.bf16.msra.mxu0 %v4644_v27 }
 0xda4   :  { %4649 = vmatprep.subr.bf16.mxu0 %v4648_v28 }
 0xda7   :  { %4651 = vmatpush3.bf16.msra.mxu0 %v4648_v28  ;;  %v4035_v28 = vld [vmem:[%s5713_s3 + $0x1] ss:$0 sm:$0xff]  ;;  %s5758_s3 = smov 112  }
 0xda8   :  { %4653 = vmatprep.subr.bf16.mxu0 %v4652_v31 }
 0xdab   :  { %4655 = vmatpush3.bf16.msra.mxu0 %v4652_v31 }
 0xe65   :  { %v4382_v50 = vpop.f32.mrb[16].mxu0 }
 0xe66   :  { %v1759_v51 = vadd.f32 %v4382_v50, %v4024_v40  ;;  %v1753_v38 = vpop.f32.mrb[17].mxu0  ;;  %v1917_v50 = vld [vmem:[%s5722_s12 + $0x78] sm:$0xff] }
 0xe67   :  { %v1754_v52 = vadd.f32 %v4024_v40, %v1753_v38  ;;  %v1916_v40 = vld [vmem:[%s5722_s12 + $0x70] sm:$0xff]  ;;  %v4029_v38 = vld [vmem:[%s5721_s11] ss:$0 sm:$0xff] }
 0xe68   :  { %v5242_v53 = vadd.f32 %v1759_v51, %v5011_v26  ;;  %v4656_v51 = vpack.c.bf16 %v1917_v50, %v1916_v40 }
 0xe69   :  { %v5245_v54 = vadd.f32 %v1754_v52, %v5009_v25 }
 0xe6a   :  { %v1769_v55 = vsel %vm172_vm3, %v5242_v53, 0.0  ;;  %4657 = vmatprep.subr.bf16.mxu0 %v4656_v51 }
 0xe6b   :  { %1770 = vadd.xlane.f32.xlu0 %v1769_v55  ;;  %v1766_v56 = vsel %vm172_vm3, %v5245_v54, 0.0  ;;  %4659 = vmatpush3.bf16.msra.mxu0 %v4656_v51 }
 0xe6c   :  { %1767 = vadd.xlane.f32.xlu1 %v1766_v56  ;;  %4470 = vmatprep.subr.mxu0 %v4853_v11 }
 0xef8   :  { %v1771_v57 = vpop.xlane.xlu0 %1770 }
 0xef9   :  { %v1773_v58 = vmul.f32 0.03125, %v1771_v57  ;;  %v1768_v59 = vpop.xlane.xlu1 %1767 }
 0xefa   :  { %v1772_v60 = vmul.f32 0.03125, %v1768_v59 }
 0xefb   :  { %v5252_v63 = vsub.f32 %v5242_v53, %v1773_v58 }
 0xefc   :  { %v5255_v26 = vsub.f32 %v5245_v54, %v1772_v60  ;;  %v4032_v60 = vld [vmem:[%s5757_s26] ss:$0 sm:$0xff] }
 0xefd   :  { %v1777_v25 = vmul.f32 %v5252_v63, %v5252_v63 }
 0xefe   :  { %v1776_v0 = vmul.f32 %v5255_v26, %v5255_v26 }
 0xeff   :  { %v1781_v1 = vsel %vm172_vm3, %v1777_v25, 0.0 }
 0xf00   :  { %1782 = vadd.xlane.f32.xlu1 %v1781_v1  ;;  %v1778_v3 = vsel %vm172_vm3, %v1776_v0, 0.0 }
 0xf01   :  { %1779 = vadd.xlane.f32.xlu0 %v1778_v3 }
 0xf8d   :  { %v1783_v32 = vpop.xlane.xlu1 %1782 }
 0xf8e   :  { %v1785_v33 = vmul.f32 0.03125, %v1783_v32  ;;  %v1780_v34 = vpop.xlane.xlu0 %1779  ;;  %v4036_v32 = vld [vmem:[%s5714_s4 + $0x1] ss:$0 sm:$0xff]  ;;  %s5759_s4 = smov 48  }
 0xf8f   :  { %v1784_v35 = vmul.f32 0.03125, %v1780_v34 }
 0xf90   :  { %v1787_v36 = vadd.f32 1e-05, %v1785_v33 }
 0xf91   :  { %v1786_v37 = vadd.f32 1e-05, %v1784_v35 }
 0xf92   :  { %4780 = vrsqrt.f32 %v1787_v36 }
 0xf93   :  { %4782 = vrsqrt.f32 %v1786_v37 }
 0xf9c   :  { %v4781_v39 = vpop.eup %4780 }
 0xf9d   :  { %v4783_v42 = vpop.eup %4782  ;;  %v1791_v43 = vmul.f32 %v4781_v39, %v5252_v63 }
 0xf9e   :  { %v1790_v44 = vmul.f32 %v4783_v42, %v5255_v26 }
 0xf9f   :  { %v1799_v46 = vmul.f32 %v4027_v41, %v1791_v43 }
 0xfa0   :  { %v1798_v47 = vmul.f32 %v4027_v41, %v1790_v44 }
 0xfa1   :  { %v1807_v49 = vadd.f32 %v4028_v45, %v1799_v46 }
 0xfa2   :  { %v1806_v48 = vadd.f32 %v4028_v45, %v1798_v47 }
 0xfa4   :  { %4391 = vmatprep.mubr.msk.f32.mxu1 %vm172_vm3, %v1806_v48 }
 0xfa5   :  { %4392 = vmatmul.mubr.msk.f32.vlgmr.msra.gmra.mrb[20].mxu1 %vm172_vm3, %v1807_v49 }
 0xfa6   :  { %4663 = vmatpush3.bf16.msra.mxu1 %v4660_v19 }
 0xfa7   :  { %4665 = vmatprep.subr.bf16.mxu1 %v4664_v22 }
 0xfaa   :  { %4667 = vmatpush3.bf16.msra.mxu1 %v4664_v22 }
 0xfab   :  { %4440 = vmatprep.subr.mxu1 %v4853_v11 }
0x1078   :  { %v4393_v52 = vpop.f32.mrb[20].mxu1 }
0x1079   :  { %v1897_v55 = vadd.f32 %v4393_v52, %v4029_v38  ;;  %v1891_v56 = vpop.f32.mrb[21].mxu1 }
0x107a   :  { %v1892_v57 = vadd.f32 %v4029_v38, %v1891_v56 }
0x107b   :  { %v1901_v59 = vmax.f32 %v1897_v55, 0.0 }
0x107c   :  { %v1900_v58 = vmax.f32 %v1892_v57, 0.0 }
0x107e   :  { %4426 = vmatprep.mubr.f32.mxu0 %v1900_v58 }
0x107f   :  { %4427 = vmatmul.mubr.f32.vlgmr.msra.gmra.mrb[18].mxu0 %v1901_v59 }
0x1080   :  { %4472 = vmatprep.mubr.msk.f32.mxu0 %vm4854_vm4, %v4853_v11 }
0x1152   :  { %v4428_v63 = vpop.f32.mrb[18].mxu0 }
0x1153   :  { %v1997_v26 = vadd.f32 %v4428_v63, %v4032_v60  ;;  %v1991_v25 = vpop.f32.mrb[19].mxu0 }
0x1154   :  { %v1992_v0 = vadd.f32 %v4032_v60, %v1991_v25 }
0x1155   :  { %v5343_v1 = vadd.f32 %v1997_v26, %v5242_v53 }
0x1156   :  { %v5346_v3 = vadd.f32 %v1992_v0, %v5245_v54 }
0x1157   :  { %v2009_v4 = vsel %vm172_vm3, %v5343_v1, 0.0 }
0x1158   :  { %2010 = vadd.xlane.f32.xlu1 %v2009_v4  ;;  %v2006_v5 = vsel %vm172_vm3, %v5346_v3, 0.0 }
0x1159   :  { %2007 = vadd.xlane.f32.xlu0 %v2006_v5 }
0x11e5   :  { %v2011_v6 = vpop.xlane.xlu1 %2010 }
0x11e6   :  { %v2013_v7 = vmul.f32 0.03125, %v2011_v6  ;;  %v2008_v8 = vpop.xlane.xlu0 %2007 }
0x11e7   :  { %v2012_v9 = vmul.f32 0.03125, %v2008_v8 }
0x11e8   :  { %v2015_v10 = vsub.f32 %v5343_v1, %v2013_v7 }
0x11e9   :  { %v2014_v53 = vsub.f32 %v5346_v3, %v2012_v9 }
0x11ea   :  { %v2017_v12 = vmul.f32 %v2015_v10, %v2015_v10 }
0x11eb   :  { %v2016_v13 = vmul.f32 %v2014_v53, %v2014_v53 }
0x11ec   :  { %v2021_v54 = vsel %vm172_vm3, %v2017_v12, 0.0 }
0x11ed   :  { %2022 = vadd.xlane.f32.xlu1 %v2021_v54  ;;  %v2018_v15 = vsel %vm172_vm3, %v2016_v13, 0.0 }
0x11ee   :  { %2019 = vadd.xlane.f32.xlu0 %v2018_v15 }
0x127a   :  { %v2023_v61 = vpop.xlane.xlu1 %2022 }
0x127b   :  { %v2025_v16 = vmul.f32 0.03125, %v2023_v61  ;;  %v2020_v23 = vpop.xlane.xlu0 %2019 }
0x127c   :  { %v2024_v24 = vmul.f32 0.03125, %v2020_v23 }
0x127d   :  { %v2027_v27 = vadd.f32 1e-05, %v2025_v16 }
0x127e   :  { %v2026_v62 = vadd.f32 1e-05, %v2024_v24 }
0x127f   :  { %4784 = vrsqrt.f32 %v2027_v27 }
0x1280   :  { %4786 = vrsqrt.f32 %v2026_v62 }
0x1289   :  { %v4785_v14 = vpop.eup %4784 }
0x128a   :  { %v4787_v29 = vpop.eup %4786  ;;  %v2031_v30 = vmul.f32 %v4785_v14, %v2015_v10 }
0x128b   :  { %v2030_v31 = vmul.f32 %v4787_v29, %v2014_v53 }
0x128c   :  { %v2039_v33 = vmul.f32 %v4035_v28, %v2031_v30 }
0x128d   :  { %v2038_v34 = vmul.f32 %v4035_v28, %v2030_v31 }
0x128e   :  { %v2047_v36 = vadd.f32 %v4036_v32, %v2039_v33 }
0x128f   :  { %v2046_v35 = vadd.f32 %v4036_v32, %v2038_v34 }
0x1291   :  { %4437 = vmatprep.mubr.msk.f32.mxu1 %vm172_vm3, %v2046_v35 }
0x1292   :  { %4438 = vmatmul.mubr.msk.f32.vlgmr.msra.gmra.mrb[22].mxu1 %vm172_vm3, %v2047_v36 }
0x1293   :  { %4442 = vmatprep.mubr.msk.f32.mxu1 %vm4854_vm4, %v4853_v11 }
0x1365   :  { %v5379_v37 = vpop.f32.mrb[22].mxu1 }
0x1366   :  { %2212 = vrot.lane.b32.xlu1 %v5379_v37, %s4855_s19  ;;  %v5383_v39 = vpop.f32.mrb[23].mxu1 }
0x1367   :  { %2135 = vrot.lane.b32.xlu0 %v5383_v39, %s4855_s19  ;;  %s5760_s19 = smov 72  }
0x13d8   :  { %v2213_v42 = vpop.permute.xlu1 %2212 }
0x13d9   :  { %v2136_v41 = vpop.permute.xlu0 %2135 }
0x13da   :  { %4441 = vmatpush3.xpose.msk.msra.mxu1 %vm304_vm5, %v2136_v41 }
0x13db   :  { %4445 = vmatprep.subr.mxu1 %v4853_v11 }
0x13dd   :  { %4443 = vmatmul.mubr.msk.f32.vlgmr.msra.gmra.mrb[24].mxu1 %vm304_vm5, %v5383_v39 }
0x13de   :  { %4446 = vmatpush3.xpose.msk.msra.mxu1 %vm304_vm5, %v2213_v42  ;;  %4447 = vmatprep.mubr.msk.f32.mxu1 %vm4854_vm4, %v4853_v11 }
0x13df   :  { %4450 = vmatprep.subr.mxu1 %v4853_v11 }
0x13e1   :  { %4448 = vmatmul.mubr.msk.f32.vlgmr.msra.gmra.mrb[26].mxu1 %vm304_vm5, %v5379_v37 }
0x13e2   :  { %4452 = vmatprep.mubr.msk.f32.mxu1 %vm4854_vm4, %v4853_v11 }
0x14b0   :  { %v2207_v43 = vpop.f32.mrb[24].mxu1 }
0x14b1   :  { %v2288_v44 = vmul.f32 0.17677669, %v2207_v43  ;;  %v4444_v45 = vpop.f32.mrb[25].mxu1 }
0x14b3   :  { %v2290_v46 = vsel %vm5068_vm6, %v2288_v44, -1e+30 }
0x14b4   :  { %v2284_v47 = vpop.f32.mrb[26].mxu1  ;;  %v2292_v48 = vsel %vm304_vm5, %v2290_v46, -inf }
0x14b5   :  { %v2289_v49 = vmul.f32 0.17677669, %v2284_v47  ;;  %2293 = vmax.xlane.f32.xlu1 %v2292_v48  ;;  %v4449_v40 = vpop.f32.mrb[27].mxu1 }
0x14b7   :  { %v2291_v50 = vsel %vm5068_vm6, %v2289_v49, -1e+30 }
0x14b8   :  { %v2295_v51 = vsel %vm304_vm5, %v2291_v50, -inf }
0x14b9   :  { %2296 = vmax.xlane.f32.xlu0 %v2295_v51 }
0x14c6   :  { %2390 = vrot.lane.b32.xlu1 %v5379_v37, %s4856_s13 }
0x14ca   :  { %2468 = vrot.lane.b32.xlu1 %v5383_v39, %s4857_s1 }
0x1542   :  { %v2294_v38 = vpop.xlane.xlu1 %2293 }
0x1543   :  { %v2298_v52 = vsub.f32 %v2290_v46, %v2294_v38 }
0x1545   :  { %v2300_v55 = vmul.f32 1.442695, %v2298_v52 }
0x1546   :  { %v2297_v56 = vpop.xlane.xlu0 %2296  ;;  %v2391_v25 = vpop.permute.xlu1 %2390 }
0x1547   :  { %4788 = vpow2.f32 %v2300_v55  ;;  %v2299_v57 = vsub.f32 %v2291_v50, %v2297_v56 }
0x1549   :  { %v2302_v58 = vmul.f32 1.442695, %v2299_v57 }
0x154a   :  { %v2469_v0 = vpop.permute.xlu1 %2468 }
0x154b   :  { %4790 = vpow2.f32 %v2302_v58 }
0x1551   :  { %v4789_v59 = vpop.eup %4788 }
0x1552   :  { %v2304_v60 = vsel %vm304_vm5, %v4789_v59, 0.0 }
0x1553   :  { %2305 = vadd.xlane.f32.xlu0 %v2304_v60 }
0x1555   :  { %v4791_v63 = vpop.eup %4790 }
0x1556   :  { %v2307_v26 = vsel %vm304_vm5, %v4791_v63, 0.0 }
0x1557   :  { %2308 = vadd.xlane.f32.xlu1 %v2307_v26 }
0x1568   :  { %2546 = vrot.lane.b32.xlu1 %v5379_v37, %s4857_s1  ;;  %s5762_s1 = smov 40  }
0x1569   :  { %2314 = vrot.lane.b32.xlu0 %v5383_v39, %s4856_s13  ;;  %s5761_s13 = smov 104  }
0x156d   :  { %2466 = vrot.lane.b32.xlu0 %v5383_v39, %s4858_s20 }
0x1571   :  { %2544 = vrot.lane.b32.xlu0 %v5379_v37, %s4858_s20  ;;  %s5763_s20 = smov 8  }
0x15e0   :  { %v2306_v4 = vpop.xlane.xlu0 %2305 }
0x15e1   :  { %4792 = vrcp.f32 %v2306_v4 }
0x15e4   :  { %v2309_v5 = vpop.xlane.xlu1 %2308  ;;  %v2315_v6 = vpop.permute.xlu0 %2314 }
0x15e5   :  { %4794 = vrcp.f32 %v2309_v5  ;;  %4451 = vmatpush3.msra.mxu1 %v2315_v6 }
0x15e6   :  { %4455 = vmatprep.subr.mxu1 %v4853_v11 }
0x15e8   :  { %v2467_v53 = vpop.permute.xlu0 %2466  ;;  %v2547_v12 = vpop.permute.xlu1 %2546 }
0x15eb   :  { %v4793_v7 = vpop.eup %4792 }
0x15ec   :  { %v2311_v8 = vmul.f32 %v4793_v7, %v4789_v59  ;;  %v2545_v13 = vpop.permute.xlu0 %2544 }
0x15ee   :  { %4453 = vmatmul.mubr.msk.f32.vlgmr.msra.gmra.mrb[28].mxu1 %vm304_vm5, %v2311_v8 }
0x15ef   :  { %v4795_v9 = vpop.eup %4794  ;;  %4456 = vmatpush3.msra.mxu1 %v2391_v25  ;;  %4457 = vmatprep.mubr.msk.f32.mxu1 %vm4854_vm4, %v4853_v11 }
0x15f0   :  { %v2313_v10 = vmul.f32 %v4795_v9, %v4791_v63  ;;  %4460 = vmatprep.subr.mxu1 %v4853_v11 }
0x15f2   :  { %4458 = vmatmul.mubr.msk.f32.vlgmr.msra.gmra.mrb[30].mxu1 %vm304_vm5, %v2313_v10 }
0x15f3   :  { %4462 = vmatprep.mubr.msk.f32.mxu1 %vm4854_vm4, %v4853_v11 }
0x15f6   :  { %4461 = vmatpush3.xpose.msk.msra.mxu1 %vm304_vm5, %v2469_v0 }
0x15f7   :  { %4465 = vmatprep.subr.mxu1 %v4853_v11 }
0x15f9   :  { %4463 = vmatmul.mubr.msk.f32.vlgmr.msra.gmra.mrb[32].mxu1 %vm304_vm5, %v2467_v53 }
0x15fa   :  { %4466 = vmatpush3.xpose.msk.msra.mxu1 %vm304_vm5, %v2547_v12  ;;  %4467 = vmatprep.mubr.msk.f32.mxu1 %vm4854_vm4, %v4853_v11 }
0x15fb   :  { %4475 = vmatprep.subr.mxu1 %v4853_v11 }
0x15fd   :  { %4468 = vmatmul.mubr.msk.f32.vlgmr.msra.gmra.mrb[34].mxu1 %vm304_vm5, %v2545_v13 }
0x15fe   :  { %4477 = vmatprep.mubr.msk.f32.mxu1 %vm4854_vm4, %v4853_v11 }
0x16c1   :  { %v5437_v54 = vpop.f32.mrb[28].mxu1 }
0x16c2   :  { %v4454_v15 = vpop.f32.mrb[29].mxu1 }
0x16c5   :  { %v5439_v17 = vpop.f32.mrb[30].mxu1 }
0x16c6   :  { %v4459_v18 = vpop.f32.mrb[31].mxu1 }
0x16cc   :  { %v2540_v19 = vpop.f32.mrb[32].mxu1 }
0x16cd   :  { %v2622_v20 = vmul.f32 0.17677669, %v2540_v19  ;;  %v4464_v21 = vpop.f32.mrb[33].mxu1 }
0x16cf   :  { %v2624_v22 = vsel %vm5068_vm6, %v2622_v20, -1e+30 }
0x16d0   :  { %v2618_v61 = vpop.f32.mrb[34].mxu1  ;;  %v2626_v16 = vsel %vm304_vm5, %v2624_v22, -inf }
0x16d1   :  { %v2623_v23 = vmul.f32 0.17677669, %v2618_v61  ;;  %2627 = vmax.xlane.f32.xlu1 %v2626_v16  ;;  %v4469_v24 = vpop.f32.mrb[35].mxu1 }
0x16d3   :  { %v2625_v27 = vsel %vm5068_vm6, %v2623_v23, -1e+30 }
0x16d4   :  { %v2629_v62 = vsel %vm304_vm5, %v2625_v27, -inf }
0x16d5   :  { %2630 = vmax.xlane.f32.xlu0 %v2629_v62 }
0x16e2   :  { %2724 = vrot.lane.b32.xlu1 %v5379_v37, %s4859_s21 }
0x16e6   :  { %2802 = vrot.lane.b32.xlu1 %v5383_v39, %s4860_s22 }
0x16eb   :  { %2648 = vrot.lane.b32.xlu0 %v5383_v39, %s4859_s21  ;;  %s5764_s21 = smov 16  }
0x175e   :  { %v2628_v14 = vpop.xlane.xlu1 %2627 }
0x175f   :  { %v2632_v28 = vsub.f32 %v2624_v22, %v2628_v14 }
0x1761   :  { %v2634_v29 = vmul.f32 1.442695, %v2632_v28 }
0x1762   :  { %v2725_v30 = vpop.permute.xlu1 %2724  ;;  %v2631_v31 = vpop.xlane.xlu0 %2630 }
0x1763   :  { %4796 = vpow2.f32 %v2634_v29  ;;  %v2633_v32 = vsub.f32 %v2625_v27, %v2631_v31  ;;  %4476 = vmatpush3.msra.mxu1 %v2725_v30 }
0x1764   :  { %4485 = vmatprep.subr.mxu1 %v4853_v11 }
0x1765   :  { %v2636_v33 = vmul.f32 1.442695, %v2633_v32 }
0x1766   :  { %v2649_v34 = vpop.permute.xlu0 %2648  ;;  %v2803_v43 = vpop.permute.xlu1 %2802 }
0x1767   :  { %4798 = vpow2.f32 %v2636_v33  ;;  %4471 = vmatpush3.msra.mxu0 %v2649_v34 }
0x1768   :  { %4480 = vmatprep.subr.mxu0 %v4853_v11 }
0x176d   :  { %v4797_v35 = vpop.eup %4796 }
0x176e   :  { %v2638_v36 = vsel %vm304_vm5, %v4797_v35, 0.0 }
0x176f   :  { %2639 = vadd.xlane.f32.xlu0 %v2638_v36 }
0x1771   :  { %v4799_v41 = vpop.eup %4798 }
0x1772   :  { %v2641_v42 = vsel %vm304_vm5, %v4799_v41, 0.0 }
0x1773   :  { %2642 = vadd.xlane.f32.xlu1 %v2641_v42 }
0x1784   :  { %2800 = vrot.lane.b32.xlu1 %v5383_v39, %s5758_s3 }
0x1785   :  { %2880 = vrot.lane.b32.xlu0 %v5379_v37, %s4860_s22 }
0x1789   :  { %2878 = vrot.lane.b32.xlu0 %v5379_v37, %s5758_s3 }
0x17fc   :  { %v2640_v44 = vpop.xlane.xlu0 %2639 }
0x17fd   :  { %4800 = vrcp.f32 %v2640_v44 }
0x1800   :  { %v2643_v45 = vpop.xlane.xlu1 %2642  ;;  %v2881_v49 = vpop.permute.xlu0 %2880 }
0x1801   :  { %4802 = vrcp.f32 %v2643_v45 }
0x1804   :  { %v2801_v50 = vpop.permute.xlu1 %2800  ;;  %v2879_v51 = vpop.permute.xlu0 %2878 }
0x1807   :  { %v4801_v46 = vpop.eup %4800 }
0x1808   :  { %v2645_v47 = vmul.f32 %v4801_v46, %v4797_v35 }
0x180a   :  { %4473 = vmatmul.mubr.msk.f32.vlgmr.msra.gmra.mrb[20].mxu0 %vm304_vm5, %v2645_v47 }
0x180b   :  { %v4803_v48 = vpop.eup %4802  ;;  %4481 = vmatpush3.xpose.msk.msra.mxu0 %vm304_vm5, %v2803_v43  ;;  %4482 = vmatprep.mubr.msk.f32.mxu0 %vm4854_vm4, %v4853_v11 }
0x180c   :  { %v2647_v40 = vmul.f32 %v4803_v48, %v4799_v41  ;;  %4490 = vmatprep.subr.mxu0 %v4853_v11 }
0x180e   :  { %4478 = vmatmul.mubr.msk.f32.vlgmr.msra.gmra.mrb[36].mxu1 %vm304_vm5, %v2647_v40  ;;  %4483 = vmatmul.mubr.msk.f32.vlgmr.msra.gmra.mrb[22].mxu0 %vm304_vm5, %v2801_v50 }
0x180f   :  { %4486 = vmatpush3.xpose.msk.msra.mxu1 %vm304_vm5, %v2881_v49  ;;  %4487 = vmatprep.mubr.msk.f32.mxu1 %vm4854_vm4, %v4853_v11 }
0x1810   :  { %4495 = vmatprep.subr.mxu1 %v4853_v11  ;;  %4492 = vmatprep.mubr.msk.f32.mxu0 %vm4854_vm4, %v4853_v11 }
0x1812   :  { %4488 = vmatmul.mubr.msk.f32.vlgmr.msra.gmra.mrb[38].mxu1 %vm304_vm5, %v2879_v51 }
0x1813   :  { %4497 = vmatprep.mubr.msk.f32.mxu1 %vm4854_vm4, %v4853_v11 }
0x18dd   :  { %v5479_v38 = vpop.f32.mrb[20].mxu0 }
0x18de   :  { %v4474_v52 = vpop.f32.mrb[21].mxu0 }
0x18e1   :  { %v5481_v55 = vpop.f32.mrb[36].mxu1  ;;  %v2874_v56 = vpop.f32.mrb[22].mxu0 }
0x18e2   :  { %v2956_v57 = vmul.f32 0.17677669, %v2874_v56  ;;  %v4479_v58 = vpop.f32.mrb[37].mxu1  ;;  %v4484_v59 = vpop.f32.mrb[23].mxu0 }
0x18e4   :  { %v2958_v60 = vsel %vm5068_vm6, %v2956_v57, -1e+30 }
0x18e5   :  { %v2952_v63 = vpop.f32.mrb[38].mxu1  ;;  %v2960_v26 = vsel %vm304_vm5, %v2958_v60, -inf }
0x18e6   :  { %v2957_v25 = vmul.f32 0.17677669, %v2952_v63  ;;  %2961 = vmax.xlane.f32.xlu1 %v2960_v26  ;;  %v4489_v0 = vpop.f32.mrb[39].mxu1  ;;  %v4068_v26 = vld [vmem:[%s5716_s6 + $0x28] sm:$0xff] }
0x18e7   :  { %v4069_v0 = vld [vmem:[%s5716_s6 + $0x30] sm:$0xff] }
0x18e8   :  { %v2959_v4 = vsel %vm5068_vm6, %v2957_v25, -1e+30 }
0x18e9   :  { %v2963_v5 = vsel %vm304_vm5, %v2959_v4, -inf }
0x18ea   :  { %2964 = vmax.xlane.f32.xlu0 %v2963_v5 }
0x18f7   :  { %3058 = vrot.lane.b32.xlu1 %v5379_v37, %s5759_s4 }
0x18fb   :  { %3136 = vrot.lane.b32.xlu1 %v5383_v39, %s5760_s19 }
0x1900   :  { %2982 = vrot.lane.b32.xlu0 %v5383_v39, %s5759_s4 }
0x1973   :  { %v2962_v6 = vpop.xlane.xlu1 %2961 }
0x1974   :  { %v2966_v7 = vsub.f32 %v2958_v60, %v2962_v6 }
0x1976   :  { %v2968_v8 = vmul.f32 1.442695, %v2966_v7 }
0x1977   :  { %v3059_v9 = vpop.permute.xlu1 %3058  ;;  %v2965_v10 = vpop.xlane.xlu0 %2964 }
0x1978   :  { %4804 = vpow2.f32 %v2968_v8  ;;  %v2967_v53 = vsub.f32 %v2959_v4, %v2965_v10  ;;  %4496 = vmatpush3.msra.mxu1 %v3059_v9  ;;  %v4070_v4 = vld [vmem:[%s5716_s6 + $0x38] sm:$0xff] }
0x1979   :  { %4505 = vmatprep.subr.mxu1 %v4853_v11  ;;  %v4672_v5 = vpack.c.bf16 %v4070_v4, %v4069_v0 }
0x197a   :  { %v2970_v12 = vmul.f32 1.442695, %v2967_v53 }
0x197b   :  { %v2983_v13 = vpop.permute.xlu0 %2982  ;;  %v3137_v21 = vpop.permute.xlu1 %3136 }
0x197c   :  { %4806 = vpow2.f32 %v2970_v12  ;;  %4491 = vmatpush3.msra.mxu0 %v2983_v13 }
0x197d   :  { %4500 = vmatprep.subr.mxu0 %v4853_v11 }
0x1982   :  { %v4805_v15 = vpop.eup %4804 }
0x1983   :  { %v2972_v18 = vsel %vm304_vm5, %v4805_v15, 0.0 }
0x1984   :  { %2973 = vadd.xlane.f32.xlu0 %v2972_v18 }
0x1986   :  { %v4807_v19 = vpop.eup %4806 }
0x1987   :  { %v2975_v20 = vsel %vm304_vm5, %v4807_v19, 0.0 }
0x1988   :  { %2976 = vadd.xlane.f32.xlu1 %v2975_v20 }
0x1999   :  { %3134 = vrot.lane.b32.xlu1 %v5383_v39, %s5761_s13 }
0x199a   :  { %3214 = vrot.lane.b32.xlu0 %v5379_v37, %s5760_s19 }
0x199e   :  { %3212 = vrot.lane.b32.xlu0 %v5379_v37, %s5761_s13 }
0x1a11   :  { %v2974_v22 = vpop.xlane.xlu0 %2973 }
0x1a12   :  { %4808 = vrcp.f32 %v2974_v22 }
0x1a15   :  { %v2977_v61 = vpop.xlane.xlu1 %2976  ;;  %v3215_v27 = vpop.permute.xlu0 %3214 }
0x1a16   :  { %4810 = vrcp.f32 %v2977_v61 }
0x1a19   :  { %v3135_v14 = vpop.permute.xlu1 %3134  ;;  %v3213_v28 = vpop.permute.xlu0 %3212 }
0x1a1c   :  { %v4809_v16 = vpop.eup %4808 }
0x1a1d   :  { %v2979_v23 = vmul.f32 %v4809_v16, %v4805_v15 }
0x1a1f   :  { %4493 = vmatmul.mubr.msk.f32.vlgmr.msra.gmra.mrb[24].mxu0 %vm304_vm5, %v2979_v23 }
0x1a20   :  { %v4811_v24 = vpop.eup %4810  ;;  %4501 = vmatpush3.xpose.msk.msra.mxu0 %vm304_vm5, %v3137_v21  ;;  %4502 = vmatprep.mubr.msk.f32.mxu0 %vm4854_vm4, %v4853_v11 }
0x1a21   :  { %v2981_v62 = vmul.f32 %v4811_v24, %v4807_v19  ;;  %4510 = vmatprep.subr.mxu0 %v4853_v11 }
0x1a23   :  { %4498 = vmatmul.mubr.msk.f32.vlgmr.msra.gmra.mrb[40].mxu1 %vm304_vm5, %v2981_v62  ;;  %4503 = vmatmul.mubr.msk.f32.vlgmr.msra.gmra.mrb[26].mxu0 %vm304_vm5, %v3135_v14 }
0x1a24   :  { %4506 = vmatpush3.xpose.msk.msra.mxu1 %vm304_vm5, %v3215_v27  ;;  %4507 = vmatprep.mubr.msk.f32.mxu1 %vm4854_vm4, %v4853_v11 }
0x1a25   :  { %4515 = vmatprep.subr.mxu1 %v4853_v11  ;;  %4512 = vmatprep.mubr.msk.f32.mxu0 %vm4854_vm4, %v4853_v11 }
0x1a27   :  { %4508 = vmatmul.mubr.msk.f32.vlgmr.msra.gmra.mrb[42].mxu1 %vm304_vm5, %v3213_v28 }
0x1a28   :  { %4517 = vmatprep.mubr.msk.f32.mxu1 %vm4854_vm4, %v4853_v11 }
0x1af2   :  { %v3054_v29 = vpop.f32.mrb[24].mxu0 }
0x1af3   :  { %v4494_v30 = vpop.f32.mrb[25].mxu0 }
0x1af6   :  { %v3130_v31 = vpop.f32.mrb[40].mxu1  ;;  %v3208_v32 = vpop.f32.mrb[26].mxu0 }
0x1af7   :  { %v3290_v33 = vmul.f32 0.17677669, %v3208_v32  ;;  %v4499_v34 = vpop.f32.mrb[41].mxu1  ;;  %v4504_v35 = vpop.f32.mrb[27].mxu0 }
0x1af9   :  { %v3292_v36 = vsel %vm5068_vm6, %v3290_v33, -1e+30 }
0x1afa   :  { %v3286_v41 = vpop.f32.mrb[42].mxu1  ;;  %v3294_v42 = vsel %vm304_vm5, %v3292_v36, -inf }
0x1afb   :  { %v3291_v43 = vmul.f32 0.17677669, %v3286_v41  ;;  %3295 = vmax.xlane.f32.xlu1 %v3294_v42  ;;  %v4509_v44 = vpop.f32.mrb[43].mxu1  ;;  %v4079_v42 = vld [vmem:[%s5720_s10 + $0x20] sm:$0xff] }
0x1afd   :  { %v3293_v45 = vsel %vm5068_vm6, %v3291_v43, -1e+30  ;;  %v4080_v43 = vld [vmem:[%s5720_s10 + $0x28] sm:$0xff] }
0x1afe   :  { %v3297_v11 = vsel %vm304_vm5, %v3293_v45, -inf  ;;  %v4676_v44 = vpack.c.bf16 %v4080_v43, %v4079_v42 }
0x1aff   :  { %3298 = vmax.xlane.f32.xlu0 %v3297_v11  ;;  %v4082_v11 = vld [vmem:[%s5720_s10 + $0x38] sm:$0xff] }
0x1b88   :  { %v3296_v46 = vpop.xlane.xlu1 %3295 }
0x1b89   :  { %v3300_v47 = vsub.f32 %v3292_v36, %v3296_v46 }
0x1b8b   :  { %v3302_v48 = vmul.f32 1.442695, %v3300_v47  ;;  %v4087_v47 = vld [vmem:[%s5722_s12 + $0x80] sm:$0xff] }
0x1b8c   :  { %v3299_v49 = vpop.xlane.xlu0 %3298 }
0x1b8d   :  { %4812 = vpow2.f32 %v3302_v48  ;;  %v3301_v40 = vsub.f32 %v3293_v45, %v3299_v49  ;;  %v4081_v45 = vld [vmem:[%s5720_s10 + $0x30] sm:$0xff]  ;;  %v4088_v48 = vld [vmem:[%s5722_s12 + $0x88] sm:$0xff] }
0x1b8e   :  { %v4680_v46 = vpack.c.bf16 %v4082_v11, %v4081_v45  ;;  %v4089_v49 = vld [vmem:[%s5722_s12 + $0x90] sm:$0xff] }
0x1b8f   :  { %v3304_v50 = vmul.f32 1.442695, %v3301_v40  ;;  %v4684_v40 = vpack.c.bf16 %v4088_v48, %v4087_v47 }
0x1b91   :  { %4814 = vpow2.f32 %v3304_v50  ;;  %v4090_v50 = vld [vmem:[%s5722_s12 + $0x98] sm:$0xff] }
0x1b97   :  { %v4813_v51 = vpop.eup %4812 }
0x1b98   :  { %v3306_v52 = vsel %vm304_vm5, %v4813_v51, 0.0 }
0x1b99   :  { %3307 = vadd.xlane.f32.xlu0 %v3306_v52  ;;  %v4091_v52 = vld [vmem:[%s5722_s12 + $0xa0] sm:$0xff] }
0x1b9b   :  { %v4815_v56 = vpop.eup %4814 }
0x1b9c   :  { %v3309_v57 = vsel %vm304_vm5, %v4815_v56, 0.0 }
0x1b9d   :  { %3310 = vadd.xlane.f32.xlu1 %v3309_v57 }
0x1bae   :  { %3392 = vrot.lane.b32.xlu1 %v5379_v37, %s5762_s1 }
0x1baf   :  { %3316 = vrot.lane.b32.xlu0 %v5383_v39, %s5762_s1 }
0x1bb2   :  { %3470 = vrot.lane.b32.xlu1 %v5479_v38, %s5763_s20 }
0x1bb3   :  { %3472 = vrot.lane.b32.xlu0 %v5481_v55, %s5763_s20  ;;  %v4067_v55 = vld [vmem:[%s5716_s6 + $0x20] sm:$0xff] }
0x1bb4   :  { %v4668_v25 = vpack.c.bf16 %v4068_v26, %v4067_v55  ;;  %v4099_v26 = vld [vmem:[%s5722_s12 + $0xe0] sm:$0xff] }
0x1bb6   :  { %3478 = vrot.lane.b32.xlu1 %v3054_v29, %s5764_s21 }
0x1bb7   :  { %3480 = vrot.lane.b32.xlu0 %v3130_v31, %s5764_s21 }
0x1c26   :  { %v3308_v2 = vpop.xlane.xlu0 %3307 }
0x1c27   :  { %4816 = vrcp.f32 %v3308_v2  ;;  %v4093_v2 = vld [vmem:[%s5722_s12 + $0xb0] sm:$0xff] }
0x1c2a   :  { %v3311_v58 = vpop.xlane.xlu1 %3310  ;;  %v3317_v59 = vpop.permute.xlu0 %3316 }
0x1c2b   :  { %4818 = vrcp.f32 %v3311_v58  ;;  %4511 = vmatpush3.msra.mxu0 %v3317_v59  ;;  %v4094_v58 = vld [vmem:[%s5722_s12 + $0xb8] sm:$0xff] }
0x1c2c   :  { %4669 = vmatprep.subr.bf16.mxu0 %v4668_v25  ;;  %v4696_v59 = vpack.c.bf16 %v4094_v58, %v4093_v2 }
0x1c2e   :  { %v3393_v37 = vpop.permute.xlu1 %3392  ;;  %v3473_v53 = vpop.permute.xlu0 %3472 }
0x1c2f   :  { %4516 = vmatpush3.msra.mxu1 %v3393_v37  ;;  %v3493_v21 = vsel %vm304_vm5, %v5439_v17, %v3473_v53  ;;  %v4095_v37 = vld [vmem:[%s5722_s12 + $0xc0] sm:$0xff] }
0x1c30   :  { %4677 = vmatprep.subr.bf16.mxu1 %v4676_v44  ;;  %v4077_v53 = vld [vmem:[%s5718_s8 + $0x1] ss:$0 sm:$0xff] }
0x1c31   :  { %v4817_v60 = vpop.eup %4816 }
0x1c32   :  { %v3313_v39 = vmul.f32 %v4817_v60, %v4813_v51  ;;  %v3471_v10 = vpop.permute.xlu1 %3470  ;;  %v3481_v15 = vpop.permute.xlu0 %3480  ;;  %v4688_v51 = vpack.c.bf16 %v4090_v50, %v4089_v49  ;;  %v4096_v60 = vld [vmem:[%s5722_s12 + $0xc8] sm:$0xff] }
0x1c33   :  { %v3492_v13 = vsel %vm304_vm5, %v5437_v54, %v3471_v10  ;;  %v3495_v22 = vsel %vm1664_vm7, %v3493_v21, %v3481_v15  ;;  %v4072_v54 = vld [vmem:[%s5717_s7 + $0x1] ss:$0 sm:$0xff] }
0x1c34   :  { %4513 = vmatmul.mubr.msk.f32.vlgmr.msra.gmra.mrb[28].mxu0 %vm304_vm5, %v3313_v39  ;;  %v4700_v39 = vpack.c.bf16 %v4096_v60, %v4095_v37 }
0x1c35   :  { %v4819_v38 = vpop.eup %4818  ;;  %4671 = vmatpush3.bf16.msra.mxu0 %v4668_v25  ;;  %v4100_v25 = vld [vmem:[%s5722_s12 + $0xe8] sm:$0xff] }
0x1c36   :  { %v3315_v63 = vmul.f32 %v4819_v38, %v4815_v56  ;;  %4673 = vmatprep.subr.bf16.mxu0 %v4672_v5  ;;  %v3479_v12 = vpop.permute.xlu1 %3478  ;;  %v4092_v56 = vld [vmem:[%s5722_s12 + $0xa8] sm:$0xff]  ;;  %v4097_v38 = vld [vmem:[%s5722_s12 + $0xd0] sm:$0xff]  ;;  %v4708_v0 = vpack.c.bf16 %v4100_v25, %v4099_v26  ;;  %v4106_v25 = vld [vmem:[%s5725_s15] ss:$0 sm:$0xff] }
0x1c37   :  { %v3494_v18 = vsel %vm1664_vm7, %v3492_v13, %v3479_v12  ;;  %v4692_v57 = vpack.c.bf16 %v4092_v56, %v4091_v52  ;;  %v3885_v52 = vld [vmem:[%s5726_s16 + $0x18] sm:$0xff] }
0x1c38   :  { %4518 = vmatmul.mubr.msk.f32.vlgmr.msra.gmra.mrb[44].mxu1 %vm304_vm5, %v3315_v63  ;;  %v4098_v63 = vld [vmem:[%s5722_s12 + $0xd8] sm:$0xff] }
0x1c39   :  { %4675 = vmatpush3.bf16.msra.mxu0 %v4672_v5  ;;  %4679 = vmatpush3.bf16.msra.mxu1 %v4676_v44  ;;  %v4704_v55 = vpack.c.bf16 %v4098_v63, %v4097_v38  ;;  %v4105_v38 = vld [vmem:[%s5724_s14] ss:$0 sm:$0xff]  ;;  %s4869_s14 = smov [#allocation2]  }
0x1c3a   :  { %4681 = vmatprep.subr.bf16.mxu1 %v4680_v46  ;;  %4685 = vmatprep.subr.bf16.mxu0 %v4684_v40  ;;  %s3981_s25 = sshll.u32 %s4869_s14, 4  ;;  %s3982_s25 = int_to_ptr.vmem [resolvable:$true] %s3981_s25 }
0x1c3b   :  { %s4828_s15 = scalar_lea.vmem %s3982_s25, 256  ;;  %p4833_p1 = scmp.lt.s32.totalorder %s3982_s25, %s3982_s25 }
0x1c3c   :  { %p4829_p0 = scmp.ne.s32.totalorder %s3982_s25, %s4828_s15  ;;  %p4834_p2 = scmp.lt.s32.totalorder %s4828_s15, %s4828_s15 }
0x1c3d   :  { %4683 = vmatpush3.bf16.msra.mxu1 %v4680_v46 }
0x1c3e   :  { %p4835_p3 = por %p4834_p2, %p4833_p1 }
0x1c40   :  { %p4836_p4 = pnand %p4835_p3, %p4829_p0 }
0x1d07   :  { %v3388_v6 = vpop.f32.mrb[28].mxu0 }
0x1d08   :  { %3486 = vrot.lane.b32.xlu1 %v3388_v6, %s5765_s27  ;;  %v4514_v7 = vpop.f32.mrb[29].mxu0 }
0x1d0b   :  { %v3464_v8 = vpop.f32.mrb[44].mxu1 }
0x1d0c   :  { %3488 = vrot.lane.b32.xlu0 %v3464_v8, %s5765_s27  ;;  %v4519_v9 = vpop.f32.mrb[45].mxu1 }
0x1d7a   :  { %v3487_v19 = vpop.permute.xlu1 %3486 }
0x1d7b   :  { %v3496_v20 = vsel %vm1667_vm8, %v3494_v18, %v3487_v19  ;;  %v4078_v18 = vld [vmem:[%s5719_s9 + $0x1] ss:$0 sm:$0xff] }
0x1d7c   :  { %4528 = vmatprep.mubr.msk.f32.mxu0 %vm172_vm3, %v3496_v20 }
0x1d7e   :  { %v3489_v61 = vpop.permute.xlu0 %3488 }
0x1d7f   :  { %v3497_v16 = vsel %vm1667_vm8, %v3495_v22, %v3489_v61  ;;  %v4101_v61 = vld [vmem:[%s5722_s12 + $0xf0] sm:$0xff] }
0x1d80   :  { %4529 = vmatmul.mubr.msk.f32.vlgmr.msra.gmra.mrb[30].mxu0 %vm172_vm3, %v3497_v16  ;;  %v4102_v16 = vld [vmem:[%s5722_s12 + $0xf8] sm:$0xff] }
0x1d81   :  { %4687 = vmatpush3.bf16.msra.mxu0 %v4684_v40  ;;  %v3883_v40 = vld [vmem:[%s5726_s16 + $0x8] sm:$0xff] }
0x1d82   :  { %4689 = vmatprep.subr.bf16.mxu0 %v4688_v51 }
0x1d85   :  { %4691 = vmatpush3.bf16.msra.mxu0 %v4688_v51  ;;  %v3884_v51 = vld [vmem:[%s5726_s16 + $0x10] sm:$0xff] }
0x1d86   :  { %4693 = vmatprep.subr.bf16.mxu0 %v4692_v57  ;;  %v4720_v56 = vpack.c.bf16 %v3885_v52, %v3884_v51 }
0x1d89   :  { %4695 = vmatpush3.bf16.msra.mxu0 %v4692_v57 }
0x1d8a   :  { %4697 = vmatprep.subr.bf16.mxu0 %v4696_v59 }
0x1d8d   :  { %4699 = vmatpush3.bf16.msra.mxu0 %v4696_v59 }
0x1d8e   :  { %4701 = vmatprep.subr.bf16.mxu0 %v4700_v39 }
0x1d91   :  { %4703 = vmatpush3.bf16.msra.mxu0 %v4700_v39 }
0x1d92   :  { %4705 = vmatprep.subr.bf16.mxu0 %v4704_v55 }
0x1d95   :  { %4707 = vmatpush3.bf16.msra.mxu0 %v4704_v55 }
0x1d96   :  { %4709 = vmatprep.subr.bf16.mxu0 %v4708_v0 }
0x1d99   :  { %4711 = vmatpush3.bf16.msra.mxu0 %v4708_v0 }
0x1e53   :  { %v4530_v23 = vpop.f32.mrb[30].mxu0 }
0x1e54   :  { %v3589_v24 = vadd.f32 %v4530_v23, %v4072_v54  ;;  %v3583_v27 = vpop.f32.mrb[31].mxu0  ;;  %v4084_v23 = vld [vmem:[%s5721_s11 + $0x1] ss:$0 sm:$0xff] }
0x1e55   :  { %v3584_v62 = vadd.f32 %v4072_v54, %v3583_v27  ;;  %v4712_v54 = vpack.c.bf16 %v4102_v16, %v4101_v61 }
0x1e56   :  { %v5569_v14 = vadd.f32 %v3589_v24, %v5343_v1 }
0x1e57   :  { %v5572_v17 = vadd.f32 %v3584_v62, %v5346_v3  ;;  %4713 = vmatprep.subr.bf16.mxu0 %v4712_v54 }
0x1e58   :  { %v3601_v28 = vsel %vm172_vm3, %v5569_v14, 0.0  ;;  %4715 = vmatpush3.bf16.msra.mxu0 %v4712_v54 }
0x1e59   :  { %3602 = vadd.xlane.f32.xlu0 %v3601_v28  ;;  %v3598_v29 = vsel %vm172_vm3, %v5572_v17, 0.0 }
0x1e5a   :  { %3599 = vadd.xlane.f32.xlu1 %v3598_v29 }
0x1ee6   :  { %v3603_v30 = vpop.xlane.xlu0 %3602 }
0x1ee7   :  { %v3605_v31 = vmul.f32 0.03125, %v3603_v30  ;;  %v3600_v32 = vpop.xlane.xlu1 %3599 }
0x1ee8   :  { %v3604_v33 = vmul.f32 0.03125, %v3600_v32 }
0x1ee9   :  { %v5579_v34 = vsub.f32 %v5569_v14, %v3605_v31  ;;  %v4104_v31 = vld [vmem:[%s5757_s26 + $0x1] ss:$0 sm:$0xff] }
0x1eea   :  { %v5582_v1 = vsub.f32 %v5572_v17, %v3604_v33 }
0x1eeb   :  { %v3609_v3 = vmul.f32 %v5579_v34, %v5579_v34 }
0x1eec   :  { %v3608_v35 = vmul.f32 %v5582_v1, %v5582_v1 }
0x1eed   :  { %v3613_v36 = vsel %vm172_vm3, %v3609_v3, 0.0 }
0x1eee   :  { %3614 = vadd.xlane.f32.xlu1 %v3613_v36  ;;  %v3610_v41 = vsel %vm172_vm3, %v3608_v35, 0.0 }
0x1eef   :  { %3611 = vadd.xlane.f32.xlu0 %v3610_v41 }
0x1f7b   :  { %v3615_v4 = vpop.xlane.xlu1 %3614 }
0x1f7c   :  { %v3617_v5 = vmul.f32 0.03125, %v3615_v4  ;;  %v3612_v6 = vpop.xlane.xlu0 %3611 }
0x1f7d   :  { %v3616_v7 = vmul.f32 0.03125, %v3612_v6 }
0x1f7e   :  { %v3619_v8 = vadd.f32 1e-05, %v3617_v5 }
0x1f7f   :  { %v3618_v9 = vadd.f32 1e-05, %v3616_v7  ;;  %v4107_v7 = vld [vmem:[%s5727_s17] ss:$0 sm:$0xff] }
0x1f80   :  { %4820 = vrsqrt.f32 %v3619_v8 }
0x1f81   :  { %4822 = vrsqrt.f32 %v3618_v9 }
0x1f8a   :  { %v4821_v10 = vpop.eup %4820 }
0x1f8b   :  { %v4823_v12 = vpop.eup %4822  ;;  %v3623_v13 = vmul.f32 %v4821_v10, %v5579_v34 }
0x1f8c   :  { %v3622_v15 = vmul.f32 %v4823_v12, %v5582_v1 }
0x1f8d   :  { %v3631_v19 = vmul.f32 %v4077_v53, %v3623_v13 }
0x1f8e   :  { %v3630_v20 = vmul.f32 %v4077_v53, %v3622_v15 }
0x1f8f   :  { %v3639_v22 = vadd.f32 %v4078_v18, %v3631_v19 }
0x1f90   :  { %v3638_v21 = vadd.f32 %v4078_v18, %v3630_v20 }
0x1f92   :  { %4539 = vmatprep.mubr.msk.f32.mxu1 %vm172_vm3, %v3638_v21 }
0x1f93   :  { %4540 = vmatmul.mubr.msk.f32.vlgmr.msra.gmra.mrb[46].mxu1 %vm172_vm3, %v3639_v22 }
0x2066   :  { %v4541_v24 = vpop.f32.mrb[46].mxu1 }
0x2067   :  { %v3731_v27 = vadd.f32 %v4541_v24, %v4084_v23  ;;  %v3725_v62 = vpop.f32.mrb[47].mxu1 }
0x2068   :  { %v3726_v28 = vadd.f32 %v4084_v23, %v3725_v62 }
0x2069   :  { %v3735_v30 = vmax.f32 %v3731_v27, 0.0 }
0x206a   :  { %v3734_v29 = vmax.f32 %v3726_v28, 0.0 }
0x206c   :  { %4574 = vmatprep.mubr.f32.mxu0 %v3734_v29 }
0x206d   :  { %4575 = vmatmul.mubr.f32.vlgmr.msra.gmra.mrb[32].mxu0 %v3735_v30 }
0x2140   :  { %v4576_v32 = vpop.f32.mrb[32].mxu0 }
0x2141   :  { %v3833_v33 = vadd.f32 %v4576_v32, %v4104_v31  ;;  %v3827_v34 = vpop.f32.mrb[33].mxu0 }
0x2142   :  { %v3828_v1 = vadd.f32 %v4104_v31, %v3827_v34 }
0x2143   :  { %v3837_v3 = vadd.f32 %v3833_v33, %v5569_v14 }
0x2144   :  { %v3836_v35 = vadd.f32 %v3828_v1, %v5572_v17  ;;  %v3882_v17 = vld [vmem:[%s5726_s16] sm:$0xff] }
0x2145   :  { %v3843_v36 = vsel %vm172_vm3, %v3837_v3, 0.0  ;;  %v4716_v50 = vpack.c.bf16 %v3883_v40, %v3882_v17 }
0x2146   :  { %3844 = vadd.xlane.f32.xlu1 %v3843_v36  ;;  %v3840_v41 = vsel %vm172_vm3, %v3836_v35, 0.0 }
0x2147   :  { %3841 = vadd.xlane.f32.xlu0 %v3840_v41  ;;  %4717 = vmatprep.subr.bf16.mxu1 %v4716_v50 }
0x2148   :  { %4719 = vmatpush3.bf16.msra.mxu1 %v4716_v50 }
0x2149   :  { %4721 = vmatprep.subr.bf16.mxu1 %v4720_v56 }
0x214c   :  { %4723 = vmatpush3.bf16.msra.mxu1 %v4720_v56 }
0x21d3   :  { %v3845_v42 = vpop.xlane.xlu1 %3844 }
0x21d4   :  { %v3847_v43 = vmul.f32 0.03125, %v3845_v42  ;;  %v3842_v44 = vpop.xlane.xlu0 %3841 }
0x21d5   :  { %v3846_v45 = vmul.f32 0.03125, %v3842_v44 }
0x21d6   :  { %v3849_v11 = vsub.f32 %v3837_v3, %v3847_v43 }
0x21d7   :  { %v3848_v46 = vsub.f32 %v3836_v35, %v3846_v45 }
0x21d8   :  { %v3851_v47 = vmul.f32 %v3849_v11, %v3849_v11 }
0x21d9   :  { %v3850_v48 = vmul.f32 %v3848_v46, %v3848_v46 }
0x21da   :  { %v3855_v49 = vsel %vm172_vm3, %v3851_v47, 0.0 }
0x21db   :  { %3856 = vadd.xlane.f32.xlu1 %v3855_v49  ;;  %v3852_v14 = vsel %vm172_vm3, %v3850_v48, 0.0 }
0x21dc   :  { %3853 = vadd.xlane.f32.xlu0 %v3852_v14 }
0x2268   :  { %v3857_v57 = vpop.xlane.xlu1 %3856 }
0x2269   :  { %v3859_v2 = vmul.f32 0.03125, %v3857_v57  ;;  %v3854_v58 = vpop.xlane.xlu0 %3853 }
0x226a   :  { %v3858_v59 = vmul.f32 0.03125, %v3854_v58 }
0x226b   :  { %v3861_v37 = vadd.f32 1e-05, %v3859_v2 }
0x226c   :  { %v3860_v60 = vadd.f32 1e-05, %v3858_v59 }
0x226d   :  { %4824 = vrsqrt.f32 %v3861_v37 }
0x226e   :  { %4826 = vrsqrt.f32 %v3860_v60 }
0x2277   :  { %v4825_v39 = vpop.eup %4824 }
0x2278   :  { %v4827_v63 = vpop.eup %4826  ;;  %v3865_v55 = vmul.f32 %v4825_v39, %v3849_v11 }
0x2279   :  { %v3864_v26 = vmul.f32 %v4827_v63, %v3848_v46 }
0x227a   :  { %v3873_v0 = vmul.f32 %v4105_v38, %v3865_v55 }
0x227b   :  { %v3872_v4 = vmul.f32 %v4105_v38, %v3864_v26 }
0x227c   :  { %v3881_v6 = vadd.f32 %v4106_v25, %v3873_v0 }
0x227d   :  { %v3880_v5 = vadd.f32 %v4106_v25, %v3872_v4 }
0x227f   :  { %4585 = vmatprep.mubr.msk.f32.mxu1 %vm172_vm3, %v3880_v5 }
0x2280   :  { %4586 = vmatmul.mubr.msk.f32.vlgmr.msra.gmra.mrb[48].mxu1 %vm172_vm3, %v3881_v6 }
0x2353   :  { %v4587_v8 = vpop.f32.mrb[48].mxu1 }
0x2354   :  { %v3971_v9 = vadd.f32 %v4587_v8, %v4107_v7  ;;  %v3965_v10 = vpop.f32.mrb[49].mxu1 }
0x2355   :  { %v3966_v53 = vadd.f32 %v4107_v7, %v3965_v10 }
0x2356   :  { %3975 = vst.msk [vmem:[#allocation2 + $0x8] sm:$0xff] %vm85_vm0, %v3971_v9 }
0x2357   :  { %3974 = vst.msk [vmem:[#allocation2] sm:$0xff] %vm85_vm0, %v3966_v53 }
0x2358   :  { %4839 = shalt.err (!%p4836_p4)
}
0x2359   :  { %s4840_s6 = scalar_lea.hbm %s5728_s18, 256 }
0x235a   :  { %p4841_p5 = scmp.ne.s32.totalorder %s5728_s18, %s4840_s6  ;;  %p4844_p6 = scmp.lt.u32.totalorder %s4840_s6, %s5728_s18 }
0x235c   :  { %p4846_p7 = pnand %p4844_p6, %p4841_p5 }
0x235e   :  { %4849 = shalt.err (!%p4846_p7)
}
0x235f   :  { %s4870_s3 = smov 128  }
0x2360   :  { %3987 = dma.vmem_to_hbm [thread:$0]  %s3982_s25, 256, %s5728_s18, [#allocation3], %s4870_s3, %s4870_s3, %s5763_s20  }
0x2361   :  { %4850 = dma.done.wait [#allocation3], 256  }
0x2362   :  { %4851 = vsyncadd [#allocation3], 4294967040 }
0x2363   :  { %3991 = vsyncpa [#allocation3], 1 }

</bundles_post_ra>
